<compile_context>
chip_gen: v5e
topology: v5e:2x2
jax: 0.10.0
libtpu: 0.0.40
codegen_flags: <defaults>
</compile_context>

<pallas_src>
import math

import jax
import jax.numpy as jnp
from jax.experimental import pallas as pl
from jax.experimental.pallas import tpu as pltpu

_LANE = 128


def _dwconv_kernel(x_ref, w_ref, b_ref, o_ref):
    # x_ref: (1, H, W, TC) input tile (one batch, one channel tile), input dtype
    # w_ref: (9, TC)       flattened 3x3 depthwise weights for this channel tile
    # b_ref: (1, TC)       bias for this channel tile
    # o_ref: (1, H, W, TC) output tile
    H = o_ref.shape[1]
    W = o_ref.shape[2]
    TC = o_ref.shape[3]
    f32 = jnp.float32

    # Single upcast of the tile; all tap math in f32 (v5e has no bf16 VALU and
    # f32 matches the PyTorch reference math).
    xv = x_ref[...].astype(f32)                              # (1, H, W, TC)

    # ---- W (sublane-axis) neighbor views: XLU roll + edge zeroing ----------
    # roll(xv, 1)[.., j, :]   == xv[.., j-1, :]  -> left neighbor  (zero at j=0)
    # roll(xv, W-1)[.., j, :] == xv[.., j+1, :]  -> right neighbor (zero at j=W-1)
    col = jax.lax.broadcasted_iota(jnp.int32, (1, 1, W, TC), 2)
    x_l = jnp.where(col == 0, jnp.zeros((), f32), pltpu.roll(xv, 1, axis=2))
    x_r = jnp.where(col == W - 1, jnp.zeros((), f32), pltpu.roll(xv, W - 1, axis=2))
    x_w = (x_l, xv, x_r)   # indexed by kw = 0, 1, 2  (dx = kw - 1)

    # ---- hoisted weight / bias loads (once per grid step) ------------------
    w = w_ref[...].astype(f32)                               # (9, TC)
    bb = b_ref[...].astype(f32).reshape(1, 1, 1, TC)
    odt = o_ref.dtype

    def wk(k):                                               # (1,1,1,TC) broadcast
        return w[k:k + 1, :].reshape(1, 1, 1, TC)

    def band_sum(lo, hi, khs):
        # Output rows [lo, hi): for tap kh, output row i reads input row i+kh-1,
        # i.e. rows [lo+kh-1, hi+kh-1) of the W-shifted views (aligned major-dim
        # band picks; out-of-range kh taps are omitted -> implicit zero halo).
        n = hi - lo
        acc = None
        for kh in khs:
            r0 = lo + kh - 1
            for kw in range(3):
                term = x_w[kw][:, r0:r0 + n, :, :] * wk(3 * kh + kw)
                acc = term if acc is None else acc + term
        return (acc + bb).astype(odt)

    # Fused MAC chains, written once per (aligned, lane-dense) row band.
    if H >= 3:
        o_ref[:, 1:H - 1, :, :] = band_sum(1, H - 1, (0, 1, 2))   # interior rows
        o_ref[:, 0:1, :, :] = band_sum(0, 1, (1, 2))              # top row
        o_ref[:, H - 1:H, :, :] = band_sum(H - 1, H, (0, 1))      # bottom row
    elif H == 2:
        o_ref[:, 0:1, :, :] = band_sum(0, 1, (1, 2))
        o_ref[:, 1:2, :, :] = band_sum(1, 2, (0, 1))
    else:  # H == 1
        o_ref[:, 0:1, :, :] = band_sum(0, 1, (1,))


def _pick_channel_tile(C_pad, N, H, W, itemsize):
    """Largest multiple-of-128 channel tile dividing C_pad such that:
      * the real per-step VMEM footprint (2x double-buffered input + 2x output
        + ~8 f32 full-tile temporaries) stays <= ~24 MiB (v7x 64 MiB VMEM safe),
      * the input block stays <= ~2 MiB (DMA efficiency plateaus beyond that),
      * the grid keeps >= 4 steps for 2-TensorCore balance / pipeline depth.
    """
    tc = _LANE
    while tc * 2 <= C_pad and C_pad % (tc * 2) == 0:
        nxt = tc * 2
        blk = H * W * nxt
        footprint = 4 * blk * itemsize + 8 * blk * 4
        steps = (C_pad // nxt) * N
        if (footprint > 24 * 1024 * 1024
                or blk * itemsize > 2 * 1024 * 1024
                or steps < 4):
            break
        tc = nxt
    return tc


def dwconv_pallas_nhwc(x_nhwc, weight, bias):
    """Depthwise 3x3 conv (stride 1, pad 1, groups=C) on NHWC input. Returns NHWC.

    This is the primary (layout-native) entry point.
    x_nhwc: (N, H, W, C); weight: (C, 1, 3, 3); bias: (C,)
    """
    N, H, W, C = x_nhwc.shape
    dtype = x_nhwc.dtype
    itemsize = jnp.dtype(dtype).itemsize

    # Pad channels to a multiple of 128 so all stores are lane-dense / unmasked.
    C_pad = ((C + _LANE - 1) // _LANE) * _LANE
    TC = _pick_channel_tile(C_pad, N, H, W, itemsize)

    # Weight (C,1,3,3) -> (9, C) with row index 3*kh + kw; bias -> (1, C).
    w_flat = jnp.transpose(weight[:, 0, :, :], (1, 2, 0)).reshape(9, C)
    w_flat = w_flat.astype(jnp.float32)
    b2d = bias.reshape(1, C).astype(jnp.float32)
    if C_pad != C:
        x_nhwc = jnp.pad(x_nhwc, ((0, 0), (0, 0), (0, 0), (0, C_pad - C)))
        w_flat = jnp.pad(w_flat, ((0, 0), (0, C_pad - C)))
        b2d = jnp.pad(b2d, ((0, 0), (0, C_pad - C)))

    # Channel tile outermost so the (9,TC)/(1,TC) weight & bias blocks keep the
    # same block index across the inner batch axis (no redundant small DMAs).
    grid = (C_pad // TC, N)

    out = pl.pallas_call(
        _dwconv_kernel,
        out_shape=jax.ShapeDtypeStruct((N, H, W, C_pad), dtype),
        grid_spec=pltpu.PrefetchScalarGridSpec(
            num_scalar_prefetch=0,
            grid=grid,
            in_specs=[
                pl.BlockSpec((1, H, W, TC), lambda c, n: (n, 0, 0, c)),
                pl.BlockSpec((9, TC), lambda c, n: (0, c)),
                pl.BlockSpec((1, TC), lambda c, n: (0, c)),
            ],
            out_specs=pl.BlockSpec((1, H, W, TC), lambda c, n: (n, 0, 0, c)),
        ),
        compiler_params=pltpu.CompilerParams(
            dimension_semantics=("parallel", "parallel"),
            # Explicit budget: TC is chosen so the true footprint is <= ~24 MiB,
            # so 32 MiB is safe on v5e/v6e (128 MiB) and v7x (64 MiB) alike.
            vmem_limit_bytes=32 * 1024 * 1024,
        ),
    )(x_nhwc, w_flat, b2d)

    if C_pad != C:
        out = out[..., :C]
    return out


def dwconv_pallas(x_nchw, weight, bias):
    """PyTorch-compatible entry: NCHW in, NCHW out.

    x_nchw: (N, C, H, W); weight: (C, 1, 3, 3); bias: (C,)
    The transposes are layout glue required by the NCHW contract only; NHWC-resident
    callers should use dwconv_pallas_nhwc directly.
    """
    x_nhwc = jnp.transpose(x_nchw, (0, 2, 3, 1))
    out_nhwc = dwconv_pallas_nhwc(x_nhwc, weight, bias)
    return jnp.transpose(out_nhwc, (0, 3, 1, 2))


def _init_params(key, dim):
    """Deterministic init matching PyTorch Conv2d default (kaiming-uniform-ish)."""
    k_w, k_b = jax.random.split(key)
    fan_in = 1 * 3 * 3  # in_channels/groups * kH * kW
    bound_w = math.sqrt(1.0 / fan_in) * math.sqrt(3.0)
    bound_b = 1.0 / math.sqrt(fan_in)
    weight = jax.random.uniform(k_w, (dim, 1, 3, 3), jnp.float32,
                                minval=-bound_w, maxval=bound_w)
    bias = jax.random.uniform(k_b, (dim,), jnp.float32,
                              minval=-bound_b, maxval=bound_b)
    return weight, bias


def _reference(x_nchw, weight, bias):
    """Pure-JAX reference: grouped conv via lax.conv_general_dilated."""
    C = x_nchw.shape[1]
    out = jax.lax.conv_general_dilated(
        x_nchw, weight,
        window_strides=(1, 1),
        padding=((1, 1), (1, 1)),
        dimension_numbers=("NCHW", "OIHW", "NCHW"),
        feature_group_count=C,
    )
    return out + bias.reshape(1, C, 1, 1)


if __name__ == "__main__":
    key = jax.random.PRNGKey(0)
    k_x, k_p = jax.random.split(key)

    N, C, H, W = 2, 4, 16, 16  # small demo; module default dim=768 works the same
    x = jax.random.normal(k_x, (N, C, H, W), jnp.float32)
    weight, bias = _init_params(k_p, C)

    ref = _reference(x, weight, bias)

    # NCHW (PyTorch-contract) path.
    out = dwconv_pallas(x, weight, bias)
    out = jax.block_until_ready(out)
    assert out.shape == (N, C, H, W)
    assert jnp.allclose(out, ref, atol=1e-5, rtol=1e-5), "NCHW path mismatch"

    # NHWC (layout-native) primary entry point.
    out_nhwc = dwconv_pallas_nhwc(jnp.transpose(x, (0, 2, 3, 1)), weight, bias)
    out_nhwc = jax.block_until_ready(out_nhwc)
    ref_nhwc = jnp.transpose(ref, (0, 2, 3, 1))
    assert jnp.allclose(out_nhwc, ref_nhwc, atol=1e-5, rtol=1e-5), "NHWC path mismatch"

    print("KERNEL_OK")
</pallas_src>

<mosaic_0001>
module attributes {stable_mosaic.version = 11 : i64} {
  func.func @_dwconv_kernel(%arg0: i32, %arg1: i32, %arg2: memref<1x16x16x128xf32, #tpu.memory_space<vmem>>, %arg3: memref<9x128xf32, #tpu.memory_space<vmem>>, %arg4: memref<1x128xf32, #tpu.memory_space<vmem>>, %arg5: memref<1x16x16x128xf32, #tpu.memory_space<vmem>>) attributes {dimension_semantics = [#tpu.dimension_semantics<parallel>, #tpu.dimension_semantics<parallel>], iteration_bounds = array<i64: 1, 2>, scalar_prefetch = 0 : i64, scratch_operands = 0 : i64, tpu.core_type = #tpu.core_type<tc>, window_params = [{transform_indices = @transform_0, window_bounds = array<i64: 1, 16, 16, 128>}, {transform_indices = @transform_1, window_bounds = array<i64: 9, 128>}, {transform_indices = @transform_2, window_bounds = array<i64: 1, 128>}, {transform_indices = @transform_3, window_bounds = array<i64: 1, 16, 16, 128>}]} {
    %c0 = arith.constant 0 : index
    %c0_0 = arith.constant 0 : index
    %c0_1 = arith.constant 0 : index
    %c0_2 = arith.constant 0 : index
    %0 = vector.load %arg2[%c0, %c0_0, %c0_1, %c0_2] : memref<1x16x16x128xf32, #tpu.memory_space<vmem>>, vector<1x16x16x128xf32>
    %1 = tpu.iota {dimensions = array<i32: 2>} : vector<1x1x16x128xi32>
    %c0_i32 = arith.constant 0 : i32
    %2 = vector.broadcast %c0_i32 : i32 to vector<1x1x16x128xi32>
    %3 = arith.cmpi eq, %1, %2 : vector<1x1x16x128xi32>
    %c1_i32 = arith.constant 1 : i32
    %4 = tpu.dynamic_rotate %0 by %c1_i32 dim 2 : vector<1x16x16x128xf32>, i32 -> vector<1x16x16x128xf32>
    %cst = arith.constant 0.000000e+00 : f32
    %5 = vector.shape_cast %3 : vector<1x1x16x128xi1> to vector<1x1x16x128xi1>
    %6 = vector.broadcast %5 : vector<1x1x16x128xi1> to vector<1x16x16x128xi1>
    %7 = vector.broadcast %cst : f32 to vector<1x16x16x128xf32>
    %8 = arith.select %6, %7, %4 : vector<1x16x16x128xi1>, vector<1x16x16x128xf32>
    %c15_i32 = arith.constant 15 : i32
    %9 = vector.broadcast %c15_i32 : i32 to vector<1x1x16x128xi32>
    %10 = arith.cmpi eq, %1, %9 : vector<1x1x16x128xi32>
    %c15_i32_3 = arith.constant 15 : i32
    %11 = tpu.dynamic_rotate %0 by %c15_i32_3 dim 2 : vector<1x16x16x128xf32>, i32 -> vector<1x16x16x128xf32>
    %cst_4 = arith.constant 0.000000e+00 : f32
    %12 = vector.shape_cast %10 : vector<1x1x16x128xi1> to vector<1x1x16x128xi1>
    %13 = vector.broadcast %12 : vector<1x1x16x128xi1> to vector<1x16x16x128xi1>
    %14 = vector.broadcast %cst_4 : f32 to vector<1x16x16x128xf32>
    %15 = arith.select %13, %14, %11 : vector<1x16x16x128xi1>, vector<1x16x16x128xf32>
    %c0_5 = arith.constant 0 : index
    %c0_6 = arith.constant 0 : index
    %16 = vector.load %arg3[%c0_5, %c0_6] : memref<9x128xf32, #tpu.memory_space<vmem>>, vector<9x128xf32>
    %c0_7 = arith.constant 0 : index
    %c0_8 = arith.constant 0 : index
    %17 = vector.load %arg4[%c0_7, %c0_8] : memref<1x128xf32, #tpu.memory_space<vmem>>, vector<1x128xf32>
    %18 = vector.shape_cast %17 : vector<1x128xf32> to vector<1x1x1x128xf32>
    %19 = vector.extract_strided_slice %8 {offsets = [0, 0, 0, 0], sizes = [1, 14, 16, 128], strides = [1, 1, 1, 1]} : vector<1x16x16x128xf32> to vector<1x14x16x128xf32>
    %20 = vector.extract_strided_slice %16 {offsets = [0, 0], sizes = [1, 128], strides = [1, 1]} : vector<9x128xf32> to vector<1x128xf32>
    %21 = vector.shape_cast %20 : vector<1x128xf32> to vector<1x1x1x128xf32>
    %22 = vector.broadcast %21 : vector<1x1x1x128xf32> to vector<1x14x16x128xf32>
    %23 = arith.mulf %19, %22 : vector<1x14x16x128xf32>
    %24 = vector.extract_strided_slice %0 {offsets = [0, 0, 0, 0], sizes = [1, 14, 16, 128], strides = [1, 1, 1, 1]} : vector<1x16x16x128xf32> to vector<1x14x16x128xf32>
    %25 = vector.extract_strided_slice %16 {offsets = [1, 0], sizes = [1, 128], strides = [1, 1]} : vector<9x128xf32> to vector<1x128xf32>
    %26 = vector.shape_cast %25 : vector<1x128xf32> to vector<1x1x1x128xf32>
    %27 = vector.broadcast %26 : vector<1x1x1x128xf32> to vector<1x14x16x128xf32>
    %28 = arith.mulf %24, %27 : vector<1x14x16x128xf32>
    %29 = arith.addf %23, %28 : vector<1x14x16x128xf32>
    %30 = vector.extract_strided_slice %15 {offsets = [0, 0, 0, 0], sizes = [1, 14, 16, 128], strides = [1, 1, 1, 1]} : vector<1x16x16x128xf32> to vector<1x14x16x128xf32>
    %31 = vector.extract_strided_slice %16 {offsets = [2, 0], sizes = [1, 128], strides = [1, 1]} : vector<9x128xf32> to vector<1x128xf32>
    %32 = vector.shape_cast %31 : vector<1x128xf32> to vector<1x1x1x128xf32>
    %33 = vector.broadcast %32 : vector<1x1x1x128xf32> to vector<1x14x16x128xf32>
    %34 = arith.mulf %30, %33 : vector<1x14x16x128xf32>
    %35 = arith.addf %29, %34 : vector<1x14x16x128xf32>
    %36 = vector.extract_strided_slice %8 {offsets = [0, 1, 0, 0], sizes = [1, 14, 16, 128], strides = [1, 1, 1, 1]} : vector<1x16x16x128xf32> to vector<1x14x16x128xf32>
    %37 = vector.extract_strided_slice %16 {offsets = [3, 0], sizes = [1, 128], strides = [1, 1]} : vector<9x128xf32> to vector<1x128xf32>
    %38 = vector.shape_cast %37 : vector<1x128xf32> to vector<1x1x1x128xf32>
    %39 = vector.broadcast %38 : vector<1x1x1x128xf32> to vector<1x14x16x128xf32>
    %40 = arith.mulf %36, %39 : vector<1x14x16x128xf32>
    %41 = arith.addf %35, %40 : vector<1x14x16x128xf32>
    %42 = vector.extract_strided_slice %0 {offsets = [0, 1, 0, 0], sizes = [1, 14, 16, 128], strides = [1, 1, 1, 1]} : vector<1x16x16x128xf32> to vector<1x14x16x128xf32>
    %43 = vector.extract_strided_slice %16 {offsets = [4, 0], sizes = [1, 128], strides = [1, 1]} : vector<9x128xf32> to vector<1x128xf32>
    %44 = vector.shape_cast %43 : vector<1x128xf32> to vector<1x1x1x128xf32>
    %45 = vector.broadcast %44 : vector<1x1x1x128xf32> to vector<1x14x16x128xf32>
    %46 = arith.mulf %42, %45 : vector<1x14x16x128xf32>
    %47 = arith.addf %41, %46 : vector<1x14x16x128xf32>
    %48 = vector.extract_strided_slice %15 {offsets = [0, 1, 0, 0], sizes = [1, 14, 16, 128], strides = [1, 1, 1, 1]} : vector<1x16x16x128xf32> to vector<1x14x16x128xf32>
    %49 = vector.extract_strided_slice %16 {offsets = [5, 0], sizes = [1, 128], strides = [1, 1]} : vector<9x128xf32> to vector<1x128xf32>
    %50 = vector.shape_cast %49 : vector<1x128xf32> to vector<1x1x1x128xf32>
    %51 = vector.broadcast %50 : vector<1x1x1x128xf32> to vector<1x14x16x128xf32>
    %52 = arith.mulf %48, %51 : vector<1x14x16x128xf32>
    %53 = arith.addf %47, %52 : vector<1x14x16x128xf32>
    %54 = vector.extract_strided_slice %8 {offsets = [0, 2, 0, 0], sizes = [1, 14, 16, 128], strides = [1, 1, 1, 1]} : vector<1x16x16x128xf32> to vector<1x14x16x128xf32>
    %55 = vector.extract_strided_slice %16 {offsets = [6, 0], sizes = [1, 128], strides = [1, 1]} : vector<9x128xf32> to vector<1x128xf32>
    %56 = vector.shape_cast %55 : vector<1x128xf32> to vector<1x1x1x128xf32>
    %57 = vector.broadcast %56 : vector<1x1x1x128xf32> to vector<1x14x16x128xf32>
    %58 = arith.mulf %54, %57 : vector<1x14x16x128xf32>
    %59 = arith.addf %53, %58 : vector<1x14x16x128xf32>
    %60 = vector.extract_strided_slice %0 {offsets = [0, 2, 0, 0], sizes = [1, 14, 16, 128], strides = [1, 1, 1, 1]} : vector<1x16x16x128xf32> to vector<1x14x16x128xf32>
    %61 = vector.extract_strided_slice %16 {offsets = [7, 0], sizes = [1, 128], strides = [1, 1]} : vector<9x128xf32> to vector<1x128xf32>
    %62 = vector.shape_cast %61 : vector<1x128xf32> to vector<1x1x1x128xf32>
    %63 = vector.broadcast %62 : vector<1x1x1x128xf32> to vector<1x14x16x128xf32>
    %64 = arith.mulf %60, %63 : vector<1x14x16x128xf32>
    %65 = arith.addf %59, %64 : vector<1x14x16x128xf32>
    %66 = vector.extract_strided_slice %15 {offsets = [0, 2, 0, 0], sizes = [1, 14, 16, 128], strides = [1, 1, 1, 1]} : vector<1x16x16x128xf32> to vector<1x14x16x128xf32>
    %67 = vector.extract_strided_slice %16 {offsets = [8, 0], sizes = [1, 128], strides = [1, 1]} : vector<9x128xf32> to vector<1x128xf32>
    %68 = vector.shape_cast %67 : vector<1x128xf32> to vector<1x1x1x128xf32>
    %69 = vector.broadcast %68 : vector<1x1x1x128xf32> to vector<1x14x16x128xf32>
    %70 = arith.mulf %66, %69 : vector<1x14x16x128xf32>
    %71 = arith.addf %65, %70 : vector<1x14x16x128xf32>
    %72 = vector.broadcast %18 : vector<1x1x1x128xf32> to vector<1x14x16x128xf32>
    %73 = arith.addf %71, %72 : vector<1x14x16x128xf32>
    %c0_9 = arith.constant 0 : index
    %c1 = arith.constant 1 : index
    %c0_10 = arith.constant 0 : index
    %c0_11 = arith.constant 0 : index
    %74 = vector.load %arg5[%c0_9, %c1, %c0_10, %c0_11] : memref<1x16x16x128xf32, #tpu.memory_space<vmem>>, vector<1x14x16x128xf32>
    tpu.vector_store %arg5[%c0_9, %c1, %c0_10, %c0_11], %73 {strides = array<i32>} : memref<1x16x16x128xf32, #tpu.memory_space<vmem>>, vector<1x14x16x128xf32>,
    %75 = vector.extract_strided_slice %8 {offsets = [0, 0, 0, 0], sizes = [1, 1, 16, 128], strides = [1, 1, 1, 1]} : vector<1x16x16x128xf32> to vector<1x1x16x128xf32>
    %76 = vector.extract_strided_slice %16 {offsets = [3, 0], sizes = [1, 128], strides = [1, 1]} : vector<9x128xf32> to vector<1x128xf32>
    %77 = vector.shape_cast %76 : vector<1x128xf32> to vector<1x1x1x128xf32>
    %78 = vector.broadcast %77 : vector<1x1x1x128xf32> to vector<1x1x16x128xf32>
    %79 = arith.mulf %75, %78 : vector<1x1x16x128xf32>
    %80 = vector.extract_strided_slice %0 {offsets = [0, 0, 0, 0], sizes = [1, 1, 16, 128], strides = [1, 1, 1, 1]} : vector<1x16x16x128xf32> to vector<1x1x16x128xf32>
    %81 = vector.extract_strided_slice %16 {offsets = [4, 0], sizes = [1, 128], strides = [1, 1]} : vector<9x128xf32> to vector<1x128xf32>
    %82 = vector.shape_cast %81 : vector<1x128xf32> to vector<1x1x1x128xf32>
    %83 = vector.broadcast %82 : vector<1x1x1x128xf32> to vector<1x1x16x128xf32>
    %84 = arith.mulf %80, %83 : vector<1x1x16x128xf32>
    %85 = arith.addf %79, %84 : vector<1x1x16x128xf32>
    %86 = vector.extract_strided_slice %15 {offsets = [0, 0, 0, 0], sizes = [1, 1, 16, 128], strides = [1, 1, 1, 1]} : vector<1x16x16x128xf32> to vector<1x1x16x128xf32>
    %87 = vector.extract_strided_slice %16 {offsets = [5, 0], sizes = [1, 128], strides = [1, 1]} : vector<9x128xf32> to vector<1x128xf32>
    %88 = vector.shape_cast %87 : vector<1x128xf32> to vector<1x1x1x128xf32>
    %89 = vector.broadcast %88 : vector<1x1x1x128xf32> to vector<1x1x16x128xf32>
    %90 = arith.mulf %86, %89 : vector<1x1x16x128xf32>
    %91 = arith.addf %85, %90 : vector<1x1x16x128xf32>
    %92 = vector.extract_strided_slice %8 {offsets = [0, 1, 0, 0], sizes = [1, 1, 16, 128], strides = [1, 1, 1, 1]} : vector<1x16x16x128xf32> to vector<1x1x16x128xf32>
    %93 = vector.extract_strided_slice %16 {offsets = [6, 0], sizes = [1, 128], strides = [1, 1]} : vector<9x128xf32> to vector<1x128xf32>
    %94 = vector.shape_cast %93 : vector<1x128xf32> to vector<1x1x1x128xf32>
    %95 = vector.broadcast %94 : vector<1x1x1x128xf32> to vector<1x1x16x128xf32>
    %96 = arith.mulf %92, %95 : vector<1x1x16x128xf32>
    %97 = arith.addf %91, %96 : vector<1x1x16x128xf32>
    %98 = vector.extract_strided_slice %0 {offsets = [0, 1, 0, 0], sizes = [1, 1, 16, 128], strides = [1, 1, 1, 1]} : vector<1x16x16x128xf32> to vector<1x1x16x128xf32>
    %99 = vector.extract_strided_slice %16 {offsets = [7, 0], sizes = [1, 128], strides = [1, 1]} : vector<9x128xf32> to vector<1x128xf32>
    %100 = vector.shape_cast %99 : vector<1x128xf32> to vector<1x1x1x128xf32>
    %101 = vector.broadcast %100 : vector<1x1x1x128xf32> to vector<1x1x16x128xf32>
    %102 = arith.mulf %98, %101 : vector<1x1x16x128xf32>
    %103 = arith.addf %97, %102 : vector<1x1x16x128xf32>
    %104 = vector.extract_strided_slice %15 {offsets = [0, 1, 0, 0], sizes = [1, 1, 16, 128], strides = [1, 1, 1, 1]} : vector<1x16x16x128xf32> to vector<1x1x16x128xf32>
    %105 = vector.extract_strided_slice %16 {offsets = [8, 0], sizes = [1, 128], strides = [1, 1]} : vector<9x128xf32> to vector<1x128xf32>
    %106 = vector.shape_cast %105 : vector<1x128xf32> to vector<1x1x1x128xf32>
    %107 = vector.broadcast %106 : vector<1x1x1x128xf32> to vector<1x1x16x128xf32>
    %108 = arith.mulf %104, %107 : vector<1x1x16x128xf32>
    %109 = arith.addf %103, %108 : vector<1x1x16x128xf32>
    %110 = vector.broadcast %18 : vector<1x1x1x128xf32> to vector<1x1x16x128xf32>
    %111 = arith.addf %109, %110 : vector<1x1x16x128xf32>
    %c0_12 = arith.constant 0 : index
    %c0_13 = arith.constant 0 : index
    %c0_14 = arith.constant 0 : index
    %c0_15 = arith.constant 0 : index
    %112 = vector.load %arg5[%c0_12, %c0_13, %c0_14, %c0_15] : memref<1x16x16x128xf32, #tpu.memory_space<vmem>>, vector<1x1x16x128xf32>
    tpu.vector_store %arg5[%c0_12, %c0_13, %c0_14, %c0_15], %111 {strides = array<i32>} : memref<1x16x16x128xf32, #tpu.memory_space<vmem>>, vector<1x1x16x128xf32>,
    %113 = vector.extract_strided_slice %8 {offsets = [0, 14, 0, 0], sizes = [1, 1, 16, 128], strides = [1, 1, 1, 1]} : vector<1x16x16x128xf32> to vector<1x1x16x128xf32>
    %114 = vector.extract_strided_slice %16 {offsets = [0, 0], sizes = [1, 128], strides = [1, 1]} : vector<9x128xf32> to vector<1x128xf32>
    %115 = vector.shape_cast %114 : vector<1x128xf32> to vector<1x1x1x128xf32>
    %116 = vector.broadcast %115 : vector<1x1x1x128xf32> to vector<1x1x16x128xf32>
    %117 = arith.mulf %113, %116 : vector<1x1x16x128xf32>
    %118 = vector.extract_strided_slice %0 {offsets = [0, 14, 0, 0], sizes = [1, 1, 16, 128], strides = [1, 1, 1, 1]} : vector<1x16x16x128xf32> to vector<1x1x16x128xf32>
    %119 = vector.extract_strided_slice %16 {offsets = [1, 0], sizes = [1, 128], strides = [1, 1]} : vector<9x128xf32> to vector<1x128xf32>
    %120 = vector.shape_cast %119 : vector<1x128xf32> to vector<1x1x1x128xf32>
    %121 = vector.broadcast %120 : vector<1x1x1x128xf32> to vector<1x1x16x128xf32>
    %122 = arith.mulf %118, %121 : vector<1x1x16x128xf32>
    %123 = arith.addf %117, %122 : vector<1x1x16x128xf32>
    %124 = vector.extract_strided_slice %15 {offsets = [0, 14, 0, 0], sizes = [1, 1, 16, 128], strides = [1, 1, 1, 1]} : vector<1x16x16x128xf32> to vector<1x1x16x128xf32>
    %125 = vector.extract_strided_slice %16 {offsets = [2, 0], sizes = [1, 128], strides = [1, 1]} : vector<9x128xf32> to vector<1x128xf32>
    %126 = vector.shape_cast %125 : vector<1x128xf32> to vector<1x1x1x128xf32>
    %127 = vector.broadcast %126 : vector<1x1x1x128xf32> to vector<1x1x16x128xf32>
    %128 = arith.mulf %124, %127 : vector<1x1x16x128xf32>
    %129 = arith.addf %123, %128 : vector<1x1x16x128xf32>
    %130 = vector.extract_strided_slice %8 {offsets = [0, 15, 0, 0], sizes = [1, 1, 16, 128], strides = [1, 1, 1, 1]} : vector<1x16x16x128xf32> to vector<1x1x16x128xf32>
    %131 = vector.extract_strided_slice %16 {offsets = [3, 0], sizes = [1, 128], strides = [1, 1]} : vector<9x128xf32> to vector<1x128xf32>
    %132 = vector.shape_cast %131 : vector<1x128xf32> to vector<1x1x1x128xf32>
    %133 = vector.broadcast %132 : vector<1x1x1x128xf32> to vector<1x1x16x128xf32>
    %134 = arith.mulf %130, %133 : vector<1x1x16x128xf32>
    %135 = arith.addf %129, %134 : vector<1x1x16x128xf32>
    %136 = vector.extract_strided_slice %0 {offsets = [0, 15, 0, 0], sizes = [1, 1, 16, 128], strides = [1, 1, 1, 1]} : vector<1x16x16x128xf32> to vector<1x1x16x128xf32>
    %137 = vector.extract_strided_slice %16 {offsets = [4, 0], sizes = [1, 128], strides = [1, 1]} : vector<9x128xf32> to vector<1x128xf32>
    %138 = vector.shape_cast %137 : vector<1x128xf32> to vector<1x1x1x128xf32>
    %139 = vector.broadcast %138 : vector<1x1x1x128xf32> to vector<1x1x16x128xf32>
    %140 = arith.mulf %136, %139 : vector<1x1x16x128xf32>
    %141 = arith.addf %135, %140 : vector<1x1x16x128xf32>
    %142 = vector.extract_strided_slice %15 {offsets = [0, 15, 0, 0], sizes = [1, 1, 16, 128], strides = [1, 1, 1, 1]} : vector<1x16x16x128xf32> to vector<1x1x16x128xf32>
    %143 = vector.extract_strided_slice %16 {offsets = [5, 0], sizes = [1, 128], strides = [1, 1]} : vector<9x128xf32> to vector<1x128xf32>
    %144 = vector.shape_cast %143 : vector<1x128xf32> to vector<1x1x1x128xf32>
    %145 = vector.broadcast %144 : vector<1x1x1x128xf32> to vector<1x1x16x128xf32>
    %146 = arith.mulf %142, %145 : vector<1x1x16x128xf32>
    %147 = arith.addf %141, %146 : vector<1x1x16x128xf32>
    %148 = vector.broadcast %18 : vector<1x1x1x128xf32> to vector<1x1x16x128xf32>
    %149 = arith.addf %147, %148 : vector<1x1x16x128xf32>
    %c0_16 = arith.constant 0 : index
    %c15 = arith.constant 15 : index
    %c0_17 = arith.constant 0 : index
    %c0_18 = arith.constant 0 : index
    %150 = vector.load %arg5[%c0_16, %c15, %c0_17, %c0_18] : memref<1x16x16x128xf32, #tpu.memory_space<vmem>>, vector<1x1x16x128xf32>
    tpu.vector_store %arg5[%c0_16, %c15, %c0_17, %c0_18], %149 {strides = array<i32>} : memref<1x16x16x128xf32, #tpu.memory_space<vmem>>, vector<1x1x16x128xf32>,
    return
  }
  func.func @transform_0(%arg0: i32, %arg1: i32) -> (i32, i32, i32, i32) {
    %c0_i32 = arith.constant 0 : i32
    %c0_i32_0 = arith.constant 0 : i32
    %c0_i32_1 = arith.constant 0 : i32
    return %arg1, %c0_i32, %c0_i32_0, %arg0 : i32, i32, i32, i32
  }
  func.func @transform_1(%arg0: i32, %arg1: i32) -> (i32, i32) {
    %c0_i32 = arith.constant 0 : i32
    %c0_i32_0 = arith.constant 0 : i32
    return %c0_i32, %arg0 : i32, i32
  }
  func.func @transform_2(%arg0: i32, %arg1: i32) -> (i32, i32) {
    %c0_i32 = arith.constant 0 : i32
    %c0_i32_0 = arith.constant 0 : i32
    return %c0_i32, %arg0 : i32, i32
  }
  func.func @transform_3(%arg0: i32, %arg1: i32) -> (i32, i32, i32, i32) {
    %c0_i32 = arith.constant 0 : i32
    %c0_i32_0 = arith.constant 0 : i32
    %c0_i32_1 = arith.constant 0 : i32
    return %arg1, %c0_i32, %c0_i32_0, %arg0 : i32, i32, i32, i32
  }
}

</mosaic_0001>

<bundles_post_ra>
// kernel: tpu_custom_call.1
= control target key start
LH: loop header
LB: loop body
LE: loop exit
PB: predicated region body
PF: predicated region fallthrough
CT: control target
= control target key end

     0   :  { %s2661_s0 = inlined_call_operand.hbm [shape: f32[2,16,16,128], index: 0, kind: input, shape index: {}]   ;;  %s2662_s1 = inlined_call_operand.hbm [shape: f32[9,128], index: 1, kind: input, shape index: {}]   ;;  %s2663_s2 = inlined_call_operand.vmem [shape: f32[1,128], index: 2, kind: input, shape index: {}]   ;;  %s2664_s3 = inlined_call_operand.hbm [shape: f32[2,16,16,128], index: 3, kind: output, shape index: {}]  }
   0x1   :  { %2666 = sst [smem:[#allocation11_spill]] %s2662_s1 }
   0x2   :  { %8 = vsyncpa [#allocation3], 0 }
   0x3   :  { %10 = vsyncpa [#allocation3 + $0x1], 0 }
   0x4   :  { %11 = vsyncpa [#allocation6], 0 }
   0x5   :  { %12 = vsyncpa [#allocation4], 0 }
   0x6   :  { %14 = vsyncpa [#allocation4 + $0x1], 0  ;;  %s1522_s12 = smov 0   ;;  %s1524_s13 = smov 0  }
   0x7   :  { %s1526_s14 = smov 0   ;;  %s1528_s15 = smov 0  }
   0x8   :  { %s1530_s16 = smov 0   ;;  %s1532_s17 = smov 0  }
   0x9 LB: > { %s1214_s18 = sadd.s32 4294967295, %s1495_s17   ;;  %s1215_s19 = sadd.s32 4294967294, %s1495_s17   ;;  %s1495_s17 = sphi %s1532_s17, %s20_s17   ;;  %s1491_s16 = sphi %s1530_s16, %s2680_s16   ;;  %s1487_s15 = sphi %s1528_s15, %s2679_s15   ;;  %s1483_s14 = sphi %s1526_s14, %s2678_s14   ;;  %s1479_s13 = sphi %s1524_s13, %s2677_s13   ;;  %s1475_s12 = sphi %s1522_s12, %s2676_s12  }
   0xa   : > { %p54_p0 = scmp.ne.s32.totalorder %s1479_s13, %s1475_s12  ;;  %p1556_p1 = scmp.eq.s32.totalorder %s1214_s18, 0 }
   0xb   : > { %p1560_p2 = scmp.eq.s32.totalorder %s1214_s18, 1  ;;  %p138_p3 = scmp.eq.s32.totalorder %s1215_s19, 1 }
   0xc   : > { %p1566_p4 = por %p1556_p1, %p54_p0  ;;  %p1216_p5 = scmp.ge.s32.totalorder %s1495_s17, 1 }
   0xd   : > { %p1571_p6 = por %p138_p3, %p54_p0  ;;  %p145_p7 = scmp.lt.s32.totalorder %s1495_s17, 3 }
   0xe   : > { %s2671_s1 = sld [smem:[#allocation11_spill]]  ;;  %s1497_s28 = smov [#allocation5]  }
   0xf   : > { %p1579_p8 = pnand %p1216_p5, %p145_p7  ;;  %s160_s29 = sshll.u32 %s1497_s28, 4  ;;  %s161_s29 = int_to_ptr.vmem [resolvable:$true] %s160_s29 }
  0x10   : > { %p1219_p11 = scmp.ge.s32.totalorder %s1495_s17, 2  ;;  %s2665_s30 = smov 128  }
  0x11   : > { %p1272_p9 = pneg %p1579_p8  ;;  %s1499_s4 = smov 8  }
  0x12   : > { %s29_s5 = sadd.s32 1, %s1491_s16  ;;  %s41_s6 = sadd.s32 1, %s1483_s14 }
  0x13   : > { %p1273_p10 = pnand %p1272_p9, %p1556_p1  ;;  %p30_p12 = scmp.ge.s32.totalorder %s29_s5, 2 }
  0x14   : > { %s158_s26 = sshll.u32 %s2671_s1, 4  ;;  %p48_p13 = scmp.ne.s32.totalorder %s1483_s14, %s1479_s13  ;;  %s159_s26 = int_to_ptr.hbm [resolvable:$true] %s158_s26 }
  0x15   : > { %1275 = dma.hbm_to_vmem [thread:$0]  (!%p1273_p10), %s159_s26, 256, %s161_s29, [#allocation6], %s2665_s30, %s2665_s30, %s1499_s4  }
  0x16   : > { %p49_p0 = scmp.eq.s32.totalorder %s1495_s17, 0  ;;  %s2682_s5 = smov (%p30_p12, %s29_s5), 0 }
  0x17   : > { %p1604_p5 = por %p1560_p2, %p48_p13  ;;  %s36_s9 = ssub.s32 %s1491_s16, %s2682_s5 }
  0x18   : > { %p1598_p3 = por %p49_p0, %p48_p13  ;;  %p1285_p7 = scmp.lt.s32.totalorder %s1495_s17, 2 }
  0x19   : > { %p39_p9 = scmp.eq.s32.totalorder %s36_s9, 0  ;;  %s180_s10 = sand.u32 1, %s1483_s14  }
  0x1a   : > { %s1220_s11 = sshll.u32 %s180_s10, 8  ;;  %s1262_s19 = sshll.u32 %s1491_s16, 8 }
  0x1b   : > { %s1613_s18 = scalar_select %p39_p9, %s1483_s14, %s41_s6  }
  0x1c   : > { %s190_s26 = scalar_lea.hbm %s2661_s0, %s1262_s19  ;;  %s184_s28 = scalar_lea.vmem [#allocation2], %s1220_s11 }
  0x1d   : > { %s193_s29 = sshll.u32 %s184_s28, 4  ;;  %s191_s21 = sshll.u32 %s190_s26, 4  ;;  %s194_s29 = int_to_ptr.vmem [resolvable:$true] %s193_s29  ;;  %s192_s21 = int_to_ptr.hbm [resolvable:$true] %s191_s21 }
  0x1e   : > { %p1277_p2 = pnand %p1285_p7, %p1598_p3  ;;  %s181_s30 = scalar_lea.sflag [#allocation3], %s180_s10 }
  0x1f   : > { %s2675_s1 = smov 128   ;;  %205 = sbr.rel (%p1579_p8) target bundleno = 233 (0xe9), region = 32 }
  0x20   : > { %1279 = dma.hbm_to_vmem [thread:$0]  (!%p1277_p2), %s192_s21, 4096, %s194_s29, %s181_s30, %s2675_s1, %s2675_s1, %s1499_s4  }
  0x21   : > { %s1627_s6 = sand.u32 (!%p1579_p8), 1, %s1479_s13  }
  0x22   : > { %s1224_s9 = sshll.u32 (!%p1579_p8), %s1627_s6, 8  ;;  %s208_s11 = scalar_lea.sflag (!%p1579_p8), [#allocation3], %s1627_s6 }
  0x23   : > { %s1633_s7 = scalar_lea.vmem (!%p1579_p8), [#allocation2], %s1224_s9 }
  0x24   : > { %1462 = dma.done.wait (%p1566_p4), %s208_s11, 4096  }
  0x25   : > { %1464 = vsyncadd (%p1566_p4), %s208_s11, 4294963200 }
  0x26   : > { %1466 = dma.done.wait (%p1556_p1), [#allocation6], 256  }
  0x27   : > { %1468 = vsyncadd (%p1556_p1), [#allocation6], 4294967040  ;;  %v278_v0 = vlaneseq  ;;  %v1646_v2 = vld [vmem:[%s1633_s7] sm:$0xff]  ;;  %v1649_v3 = vld [vmem:[%s1633_s7 + $0x8] sm:$0xff]  ;;  %s1861_s22 = scalar_lea.vmem [#allocation7], %s1224_s9  ;;  %s1263_s4 = sshll.u32 %s1487_s15, 8 }
  0x28   : > { %v1652_v4 = vld [vmem:[%s1633_s7 + $0x10] sm:$0xff]  ;;  %v1658_v5 = vld [vmem:[%s1633_s7 + $0x18] sm:$0xff]  ;;  %v1661_v6 = vld [vmem:[%s1633_s7 + $0x20] sm:$0xff]  ;;  %v283_v8 = vrot.slane %v1646_v2, 7  ;;  %v299_v10 = vrot.slane %v1649_v3, 7  ;;  %v386_v14 = vrot.slane %v1646_v2, 1  ;;  %s1101_s15 = scalar_lea.hbm %s2664_s3, %s1263_s4 }
  0x29   : > { %v1643_v1 = vshrl.u32 %v278_v0, 7  ;;  %v1664_v7 = vld [vmem:[%s1633_s7 + $0x28] sm:$0xff]  ;;  %v284_v9 = vrot.slane %v1652_v4, 7  ;;  %v285_v11 = vrot.slane %v1661_v6, 7  ;;  %v300_v12 = vrot.slane %v1658_v5, 7  ;;  %v487_v19 = vld [vmem:[#allocation5] sm:$0xff] }
  0x2a   : > { %v301_v13 = vrot.slane %v1664_v7, 7  ;;  %v387_v16 = vrot.slane %v1652_v4, 1  ;;  %v388_v17 = vrot.slane %v1661_v6, 1  ;;  %v402_v18 = vrot.slane %v1649_v3, 1  ;;  %v1761_v57 = vld [vmem:[#allocation5 + $0x8] ss:$0 sm:$0xff] }
  0x2b   : > { %vm281_vm0 = vcmp.eq.s32.totalorder %v1643_v1, 0  ;;  %vm315_vm1 = vcmp.lt.s32.totalorder %v1643_v1, 1  ;;  %vm418_vm2 = vcmp.lt.s32.totalorder %v1643_v1, 7  ;;  %v403_v22 = vrot.slane %v1658_v5, 1  ;;  %s1102_s24 = sshll.u32 %s1861_s22, 4  ;;  %s1104_s25 = sshll.u32 %s1101_s15, 4  ;;  %s1103_s24 = int_to_ptr.vmem [resolvable:$true] %s1102_s24  ;;  %s1105_s25 = int_to_ptr.hbm [resolvable:$true] %s1104_s25 }
  0x2c   : > { %v332_v15 = vsel %vm315_vm1, %v299_v10, %v283_v8  ;;  %v333_v20 = vsel %vm315_vm1, %v300_v12, %v284_v9  ;;  %v334_v21 = vsel %vm315_vm1, %v301_v13, %v285_v11  ;;  %v1688_v23 = vadd.s32 8, %v1643_v1  ;;  %s1089_s26 = scalar_lea.sflag [#allocation4], %s1627_s6  ;;  %s1423_s28 = sshra.s32 %s1105_s25, 4  ;;  %s1424_s28 = int_to_ptr.hbm [resolvable:$true] %s1423_s28 }
  0x2d   : > { %v1692_v24 = vsel %vm281_vm0, 0.0, %v332_v15  ;;  %v356_v25 = vsel %vm281_vm0, 0.0, %v334_v21  ;;  %v404_v26 = vrot.slane %v1664_v7, 1  ;;  %v1699_v27 = vsel %vm418_vm2, %v386_v14, %v402_v18  ;;  %s1425_s29 = scalar_lea.hbm %s1424_s28, 256  ;;  %s1429_s11 = scalar_lea.hbm %s2664_s3, 512 }
  0x2e   : > { %v1703_v28 = vsel %vm418_vm2, %v387_v16, %v403_v22  ;;  %v1705_v29 = vperm.slane %v487_v19, 0  ;;  %v1707_v30 = vperm.slane %v487_v19, 1  ;;  %v1709_v31 = vperm.slane %v487_v19, 2  ;;  %p1426_p1 = scmp.ne.s32.totalorder %s1424_s28, %s1425_s29  ;;  %p1430_p10 = scmp.lt.s32.totalorder %s1424_s28, %s2664_s3 }
  0x2f   : > { %v421_v32 = vsel %vm418_vm2, %v388_v17, %v404_v26  ;;  %v1713_v33 = vperm.slane %v487_v19, 3  ;;  %v1715_v34 = vperm.slane %v487_v19, 4  ;;  %v1717_v35 = vperm.slane %v487_v19, 5  ;;  %p1431_p12 = scmp.lt.s32.totalorder %s1429_s11, %s1425_s29 }
  0x30   : > { %v491_v36 = vmul.f32 %v1705_v29, %v1692_v24  ;;  %v495_v37 = vmul.f32 %v1705_v29, %v356_v25  ;;  %v520_v38 = vmul.f32 %v1707_v30, %v1646_v2  ;;  %v524_v39 = vmul.f32 %v1707_v30, %v1661_v6  ;;  %p1427_p4 = pnand %p1426_p1, %p1604_p5 }
  0x31   : > { %v1728_v40 = vsel %vm281_vm0, 0.0, %v333_v20  ;;  %v577_v41 = vmul.f32 %v1709_v31, %v1699_v27  ;;  %v581_v42 = vmul.f32 %v1709_v31, %v421_v32  ;;  %vm385_vm3 = vcmp.eq.s32.totalorder %v1688_v23, 15  ;;  %p1432_p13 = por %p1431_p12, %p1430_p10 }
  0x32   : > { %v548_v43 = vadd.f32 %v520_v38, %v491_v36  ;;  %v552_v44 = vadd.f32 %v524_v39, %v495_v37  ;;  %v634_v45 = vmul.f32 %v1713_v33, %v1728_v40  ;;  %v1738_v46 = vmul.f32 %v1709_v31, %v1703_v28  ;;  %p1428_p8 = pneg %p1427_p4 }
  0x33   : > { %v1741_v47 = vmul.f32 %v1713_v33, %v356_v25  ;;  %v691_v48 = vmul.f32 %v1715_v34, %v1652_v4  ;;  %v1745_v49 = vperm.slane %v487_v19, 6  ;;  %v748_v51 = vmul.f32 %v1717_v35, %v1703_v28 }
  0x34   : > { %v605_v50 = vadd.f32 %v577_v41, %v548_v43  ;;  %v1750_v52 = vmul.f32 %v1717_v35, %v421_v32  ;;  %v1754_v53 = vsel %vm315_vm1, %v283_v8, %v299_v10  ;;  %v1756_v54 = vadd.f32 %v581_v42, %v552_v44  ;;  %p1433_p0 = pnand %p1432_p13, %p1428_p8 }
  0x35   : > { %v805_v55 = vmul.f32 %v1745_v49, %v356_v25  ;;  %v1759_v56 = vperm.slane %v487_v19, 7  ;;  %v318_v58 = vsel %vm315_vm1, %v285_v11, %v301_v13  ;;  %v435_v60 = vsel %vm418_vm2, %v402_v18, %v386_v14  ;;  %v1811_v25 = vld [vmem:[%s1633_s7 + $0x38] sm:$0xff] }
  0x36   : > { %v662_v59 = vadd.f32 %v634_v45, %v605_v50  ;;  %v436_v61 = vsel %vm418_vm2, %v403_v22, %v387_v16  ;;  %v437_v62 = vsel %vm418_vm2, %v404_v26, %v388_v17  ;;  %v1773_v63 = vsel %vm385_vm3, 0.0, %v435_v60  ;;  %v1808_v22 = vld [vmem:[%s1633_s7 + $0x30] sm:$0xff] }
  0x37   : > { %v1777_v0 = vsel %vm385_vm3, 0.0, %v436_v61  ;;  %v460_v2 = vsel %vm385_vm3, 0.0, %v437_v62  ;;  %v492_v8 = vmul.f32 %v1705_v29, %v1754_v53  ;;  %v496_v11 = vmul.f32 %v1705_v29, %v318_v58 }
  0x38   : > { %v719_v10 = vadd.f32 %v691_v48, %v662_v59  ;;  %v521_v13 = vmul.f32 %v1707_v30, %v1649_v3  ;;  %v525_v14 = vmul.f32 %v1707_v30, %v1664_v7  ;;  %v862_v15 = vmul.f32 %v1759_v56, %v1661_v6  ;;  %v1831_v48 = vld [vmem:[%s2663_s2] ss:$0 sm:$0xff] }
  0x39   : > { %v919_v16 = vmul.f32 %v1761_v57, %v421_v32  ;;  %v1797_v17 = vsel %vm315_vm1, %v284_v9, %v300_v12  ;;  %v578_v18 = vmul.f32 %v1709_v31, %v1773_v63  ;;  %v1803_v20 = vmul.f32 %v1709_v31, %v1777_v0 }
  0x3a   : > { %v776_v3 = vadd.f32 %v748_v51, %v719_v10  ;;  %v549_v19 = vadd.f32 %v521_v13, %v492_v8  ;;  %v635_v21 = vmul.f32 %v1713_v33, %v1797_v17  ;;  %v553_v26 = vadd.f32 %v525_v14, %v496_v11 }
  0x3b   : > { %v582_v9 = vmul.f32 %v1709_v31, %v460_v2  ;;  %v1815_v12 = vmul.f32 %v1713_v33, %v318_v58  ;;  %v692_v32 = vmul.f32 %v1715_v34, %v1658_v5  ;;  %v749_v38 = vmul.f32 %v1717_v35, %v1777_v0 }
  0x3c   : > { %v833_v36 = vadd.f32 %v805_v55, %v776_v3  ;;  %v606_v37 = vadd.f32 %v578_v18, %v549_v19  ;;  %v1822_v39 = vmul.f32 %v1717_v35, %v460_v2  ;;  %v806_v41 = vmul.f32 %v1745_v49, %v318_v58 }
  0x3d   : > { %v286_v42 = vrot.slane %v1808_v22, 7  ;;  %v302_v43 = vrot.slane %v1811_v25, 7  ;;  %v389_v44 = vrot.slane %v1808_v22, 1  ;;  %v405_v51 = vrot.slane %v1811_v25, 1 }
  0x3e   : > { %v890_v45 = vadd.f32 %v862_v15, %v833_v36  ;;  %v663_v50 = vadd.f32 %v635_v21, %v606_v37  ;;  %v493_v55 = vmul.f32 %v1705_v29, %v1728_v40  ;;  %v1836_v59 = vadd.f32 %v582_v9, %v553_v26 }
  0x3f   : > { %v335_v58 = vsel %vm315_vm1, %v302_v43, %v286_v42  ;;  %v522_v60 = vmul.f32 %v1707_v30, %v1652_v4  ;;  %v526_v61 = vmul.f32 %v1707_v30, %v1808_v22  ;;  %v422_v11 = vsel %vm418_vm2, %v389_v44, %v405_v51 }
  0x40   : > { %v947_v62 = vadd.f32 %v919_v16, %v890_v45  ;;  %v720_v8 = vadd.f32 %v692_v32, %v663_v50  ;;  %v358_v10 = vsel %vm281_vm0, 0.0, %v335_v58  ;;  %v863_v13 = vmul.f32 %v1759_v56, %v1664_v7 }
  0x41   : > { %v920_v14 = vmul.f32 %v1761_v57, %v460_v2  ;;  %v497_v15 = vmul.f32 %v1705_v29, %v358_v10  ;;  %v550_v4 = vadd.f32 %v522_v60, %v493_v55  ;;  %v583_v16 = vmul.f32 %v1709_v31, %v422_v11 }
  0x42   : > { %v978_v18 = vadd.f32 %v1831_v48, %v947_v62  ;;  %v777_v3 = vadd.f32 %v749_v38, %v720_v8  ;;  %v693_v19 = vmul.f32 %v1715_v34, %v1661_v6  ;;  %v638_v9 = vmul.f32 %v1713_v33, %v358_v10 }
  0x43   : > { %v554_v21 = vadd.f32 %v526_v61, %v497_v15  ;;  %v607_v26 = vadd.f32 %v1738_v46, %v550_v4  ;;  %v752_v32 = vmul.f32 %v1717_v35, %v422_v11  ;;  %v319_v36 = vsel %vm315_vm1, %v286_v42, %v302_v43  ;;  %v1889_v61 = vld [vmem:[%s1633_s7 + $0x48] sm:$0xff] }
  0x44   : > { %1227 = vst [vmem:[%s1861_s22 + $0x10] sm:$0xff] %v978_v18  ;;  %v834_v2 = vadd.f32 %v806_v41, %v777_v3  ;;  %v438_v6 = vsel %vm418_vm2, %v405_v51, %v389_v44  ;;  %v494_v46 = vmul.f32 %v1705_v29, %v1797_v17  ;;  %v807_v38 = vmul.f32 %v1745_v49, %v358_v10  ;;  %v1882_v51 = vld [vmem:[%s1633_s7 + $0x40] sm:$0xff] }
  0x45   : > { %v664_v37 = vadd.f32 %v1741_v47, %v607_v26  ;;  %v462_v45 = vsel %vm385_vm3, 0.0, %v438_v6  ;;  %v498_v50 = vmul.f32 %v1705_v29, %v319_v36  ;;  %v864_v42 = vmul.f32 %v1759_v56, %v1808_v22 }
  0x46   : > { %v891_v41 = vadd.f32 %v863_v13, %v834_v2  ;;  %v523_v43 = vmul.f32 %v1707_v30, %v1658_v5  ;;  %v527_v44 = vmul.f32 %v1707_v30, %v1811_v25  ;;  %v1884_v47 = vadd.f32 %v583_v16, %v554_v21 }
  0x47   : > { %v721_v55 = vadd.f32 %v693_v19, %v664_v37  ;;  %v921_v58 = vmul.f32 %v1761_v57, %v422_v11  ;;  %v584_v60 = vmul.f32 %v1709_v31, %v462_v45  ;;  %v639_v10 = vmul.f32 %v1713_v33, %v319_v36 }
  0x48   : > { %v948_v62 = vadd.f32 %v920_v14, %v891_v41  ;;  %v551_v8 = vadd.f32 %v523_v43, %v494_v46  ;;  %v694_v5 = vmul.f32 %v1715_v34, %v1664_v7  ;;  %v555_v15 = vadd.f32 %v527_v44, %v498_v50 }
  0x49   : > { %v778_v13 = vadd.f32 %v1750_v52, %v721_v55  ;;  %v1896_v4 = vmul.f32 %v1717_v35, %v462_v45  ;;  %v287_v11 = vrot.slane %v1882_v51, 7  ;;  %v808_v14 = vmul.f32 %v1745_v49, %v319_v36 }
  0x4a   : > { %v979_v18 = vadd.f32 %v1831_v48, %v948_v62  ;;  %v608_v3 = vadd.f32 %v1803_v20, %v551_v8  ;;  %v303_v16 = vrot.slane %v1889_v61, 7  ;;  %v390_v21 = vrot.slane %v1882_v51, 1 }
  0x4b   : > { %v835_v19 = vadd.f32 %v807_v38, %v778_v13  ;;  %v406_v7 = vrot.slane %v1889_v61, 1  ;;  %v528_v52 = vmul.f32 %v1707_v30, %v1882_v51  ;;  %v666_v20 = vadd.f32 %v638_v9, %v1756_v54 }
  0x4c   : > { %1228 = vst [vmem:[%s1861_s22 + $0x18] sm:$0xff] %v979_v18  ;;  %v665_v26 = vadd.f32 %v1815_v12, %v608_v3  ;;  %v336_v2 = vsel %vm315_vm1, %v303_v16, %v287_v11  ;;  %v695_v36 = vmul.f32 %v1715_v34, %v1808_v22  ;;  %v865_v46 = vmul.f32 %v1759_v56, %v1811_v25 }
  0x4d   : > { %v892_v6 = vadd.f32 %v864_v42, %v835_v19  ;;  %v360_v37 = vsel %vm281_vm0, 0.0, %v336_v2  ;;  %v423_v38 = vsel %vm418_vm2, %v390_v21, %v406_v7  ;;  %v1920_v50 = vadd.f32 %v584_v60, %v555_v15  ;;  %v1945_v19 = vld [vmem:[%s1633_s7 + $0x50] sm:$0xff] }
  0x4e   : > { %v722_v12 = vadd.f32 %v694_v5, %v665_v26  ;;  %v922_v41 = vmul.f32 %v1761_v57, %v462_v45  ;;  %v499_v54 = vmul.f32 %v1705_v29, %v360_v37  ;;  %v723_v22 = vadd.f32 %v695_v36, %v666_v20  ;;  %v1953_v26 = vld [vmem:[%s1633_s7 + $0x58] sm:$0xff] }
  0x4f   : > { %v949_v9 = vadd.f32 %v921_v58, %v892_v6  ;;  %v809_v42 = vmul.f32 %v1745_v49, %v360_v37  ;;  %v866_v43 = vmul.f32 %v1759_v56, %v1882_v51  ;;  %v585_v60 = vmul.f32 %v1709_v31, %v423_v38 }
  0x50   : > { %v779_v44 = vadd.f32 %v1822_v39, %v722_v12  ;;  %v556_v55 = vadd.f32 %v528_v52, %v499_v54  ;;  %v320_v62 = vsel %vm315_vm1, %v287_v11, %v303_v16  ;;  %v780_v8 = vadd.f32 %v752_v32, %v723_v22 }
  0x51   : > { %v980_v45 = vadd.f32 %v1831_v48, %v949_v9  ;;  %v439_v58 = vsel %vm418_vm2, %v406_v7, %v390_v21  ;;  %v500_v5 = vmul.f32 %v1705_v29, %v320_v62  ;;  %v640_v15 = vmul.f32 %v1713_v33, %v360_v37 }
  0x52   : > { %v836_v13 = vadd.f32 %v808_v14, %v779_v44  ;;  %v464_v39 = vsel %vm385_vm3, 0.0, %v439_v58  ;;  %v529_v18 = vmul.f32 %v1707_v30, %v1889_v61  ;;  %v754_v11 = vmul.f32 %v1717_v35, %v423_v38 }
  0x53   : > { %1229 = vst [vmem:[%s1861_s22 + $0x20] sm:$0xff] %v980_v45  ;;  %v837_v3 = vadd.f32 %v809_v42, %v780_v8  ;;  %v923_v32 = vmul.f32 %v1761_v57, %v423_v38  ;;  %v667_v16 = vadd.f32 %v639_v10, %v1836_v59  ;;  %v1947_v14 = vadd.f32 %v585_v60, %v556_v55 }
  0x54   : > { %v893_v21 = vadd.f32 %v865_v46, %v836_v13  ;;  %v586_v7 = vmul.f32 %v1709_v31, %v464_v39  ;;  %v696_v52 = vmul.f32 %v1715_v34, %v1811_v25  ;;  %v557_v20 = vadd.f32 %v529_v18, %v500_v5 }
  0x55   : > { %v894_v2 = vadd.f32 %v866_v43, %v837_v3  ;;  %v641_v36 = vmul.f32 %v1713_v33, %v320_v62  ;;  %v810_v6 = vmul.f32 %v1745_v49, %v320_v62  ;;  %v867_v10 = vmul.f32 %v1759_v56, %v1889_v61 }
  0x56   : > { %v950_v37 = vadd.f32 %v922_v41, %v893_v21  ;;  %v724_v59 = vadd.f32 %v696_v52, %v667_v16  ;;  %v288_v46 = vrot.slane %v1945_v19, 7  ;;  %v304_v12 = vrot.slane %v1953_v26, 7 }
  0x57   : > { %v951_v38 = vadd.f32 %v923_v32, %v894_v2  ;;  %v391_v25 = vrot.slane %v1945_v19, 1  ;;  %v407_v54 = vrot.slane %v1953_v26, 1  ;;  %v530_v41 = vmul.f32 %v1707_v30, %v1945_v19 }
  0x58   : > { %v981_v9 = vadd.f32 %v1831_v48, %v950_v37  ;;  %v781_v22 = vadd.f32 %v1896_v4, %v724_v59  ;;  %v668_v42 = vadd.f32 %v640_v15, %v1884_v47  ;;  %v337_v44 = vsel %vm315_vm1, %v304_v12, %v288_v46 }
  0x59   : > { %v982_v43 = vadd.f32 %v1831_v48, %v951_v38  ;;  %v424_v55 = vsel %vm418_vm2, %v391_v25, %v407_v54  ;;  %v697_v60 = vmul.f32 %v1715_v34, %v1882_v51  ;;  %v755_v62 = vmul.f32 %v1717_v35, %v464_v39 }
  0x5a   : > { %1230 = vst [vmem:[%s1861_s22 + $0x28] sm:$0xff] %v981_v9  ;;  %v838_v4 = vadd.f32 %v810_v6, %v781_v22  ;;  %v924_v45 = vmul.f32 %v1761_v57, %v464_v39  ;;  %v362_v47 = vsel %vm281_vm0, 0.0, %v337_v44  ;;  %v1981_v8 = vadd.f32 %v586_v7, %v557_v20 }
  0x5b   : > { %1231 = vst [vmem:[%s1861_s22 + $0x30] sm:$0xff] %v982_v43  ;;  %v501_v58 = vmul.f32 %v1705_v29, %v362_v47  ;;  %v725_v5 = vadd.f32 %v697_v60, %v668_v42  ;;  %v811_v13 = vmul.f32 %v1745_v49, %v362_v47  ;;  %v587_v51 = vmul.f32 %v1709_v31, %v424_v55 }
  0x5c   : > { %v895_v15 = vadd.f32 %v867_v10, %v838_v4  ;;  %v868_v18 = vmul.f32 %v1759_v56, %v1945_v19  ;;  %v321_v39 = vsel %vm315_vm1, %v288_v46, %v304_v12  ;;  %v440_v16 = vsel %vm418_vm2, %v407_v54, %v391_v25  ;;  %v2002_v10 = vld [vmem:[%s1633_s7 + $0x60] sm:$0xff]  ;;  %v2005_v46 = vld [vmem:[%s1633_s7 + $0x68] sm:$0xff] }
  0x5d   : > { %v558_v3 = vadd.f32 %v530_v41, %v501_v58  ;;  %v782_v32 = vadd.f32 %v754_v11, %v725_v5  ;;  %v502_v21 = vmul.f32 %v1705_v29, %v321_v39  ;;  %v756_v52 = vmul.f32 %v1717_v35, %v424_v55 }
  0x5e   : > { %v952_v7 = vadd.f32 %v924_v45, %v895_v15  ;;  %v466_v2 = vsel %vm385_vm3, 0.0, %v440_v16  ;;  %v531_v20 = vmul.f32 %v1707_v30, %v1953_v26  ;;  %v642_v6 = vmul.f32 %v1713_v33, %v362_v47 }
  0x5f   : > { %v839_v37 = vadd.f32 %v811_v13, %v782_v32  ;;  %v925_v11 = vmul.f32 %v1761_v57, %v424_v55  ;;  %v669_v59 = vadd.f32 %v641_v36, %v1920_v50  ;;  %v2008_v12 = vadd.f32 %v587_v51, %v558_v3 }
  0x60   : > { %v983_v38 = vadd.f32 %v1831_v48, %v952_v7  ;;  %v643_v25 = vmul.f32 %v1713_v33, %v321_v39  ;;  %v698_v54 = vmul.f32 %v1715_v34, %v1889_v61  ;;  %v559_v22 = vadd.f32 %v531_v20, %v502_v21 }
  0x61   : > { %v896_v9 = vadd.f32 %v868_v18, %v839_v37  ;;  %v588_v41 = vmul.f32 %v1709_v31, %v466_v2  ;;  %v812_v42 = vmul.f32 %v1745_v49, %v321_v39  ;;  %v869_v36 = vmul.f32 %v1759_v56, %v1953_v26 }
  0x62   : > { %1232 = vst [vmem:[%s1861_s22 + $0x38] sm:$0xff] %v983_v38  ;;  %v726_v50 = vadd.f32 %v698_v54, %v669_v59  ;;  %v289_v43 = vrot.slane %v2002_v10, 7  ;;  %v305_v44 = vrot.slane %v2005_v46, 7  ;;  %v392_v60 = vrot.slane %v2002_v10, 1 }
  0x63   : > { %v953_v55 = vadd.f32 %v925_v11, %v896_v9  ;;  %v408_v61 = vrot.slane %v2005_v46, 1  ;;  %v532_v4 = vmul.f32 %v1707_v30, %v2002_v10  ;;  %v670_v58 = vadd.f32 %v642_v6, %v1947_v14 }
  0x64   : > { %v783_v45 = vadd.f32 %v755_v62, %v726_v50  ;;  %v338_v47 = vsel %vm315_vm1, %v305_v44, %v289_v43  ;;  %v699_v5 = vmul.f32 %v1715_v34, %v1945_v19  ;;  %v757_v15 = vmul.f32 %v1717_v35, %v466_v2 }
  0x65   : > { %v984_v13 = vadd.f32 %v1831_v48, %v953_v55  ;;  %v364_v51 = vsel %vm281_vm0, 0.0, %v338_v47  ;;  %v425_v18 = vsel %vm418_vm2, %v392_v60, %v408_v61  ;;  %v2035_v39 = vadd.f32 %v588_v41, %v559_v22 }
  0x66   : > { %v840_v62 = vadd.f32 %v812_v42, %v783_v45  ;;  %v926_v3 = vmul.f32 %v1761_v57, %v466_v2  ;;  %v503_v14 = vmul.f32 %v1705_v29, %v364_v51  ;;  %v589_v19 = vmul.f32 %v1709_v31, %v425_v18 }
  0x67   : > { %1233 = vst [vmem:[%s1861_s22 + $0x40] sm:$0xff] %v984_v13  ;;  %v727_v32 = vadd.f32 %v699_v5, %v670_v58  ;;  %v813_v16 = vmul.f32 %v1745_v49, %v364_v51  ;;  %v870_v21 = vmul.f32 %v1759_v56, %v2002_v10  ;;  %v322_v6 = vsel %vm315_vm1, %v289_v43, %v305_v44  ;;  %v2062_v43 = vld [vmem:[%s1633_s7 + $0x70] sm:$0xff]  ;;  %v2065_v44 = vld [vmem:[%s1633_s7 + $0x78] sm:$0xff] }
  0x68   : > { %v897_v7 = vadd.f32 %v869_v36, %v840_v62  ;;  %v560_v20 = vadd.f32 %v532_v4, %v503_v14  ;;  %v441_v2 = vsel %vm418_vm2, %v408_v61, %v392_v60  ;;  %v504_v59 = vmul.f32 %v1705_v29, %v322_v6 }
  0x69   : > { %v784_v37 = vadd.f32 %v756_v52, %v727_v32  ;;  %v468_v11 = vsel %vm385_vm3, 0.0, %v441_v2  ;;  %v533_v38 = vmul.f32 %v1707_v30, %v2005_v46  ;;  %v644_v9 = vmul.f32 %v1713_v33, %v364_v51 }
  0x6a   : > { %v954_v54 = vadd.f32 %v926_v3, %v897_v7  ;;  %v758_v22 = vmul.f32 %v1717_v35, %v425_v18  ;;  %v927_v41 = vmul.f32 %v1761_v57, %v425_v18  ;;  %v2056_v42 = vadd.f32 %v589_v19, %v560_v20 }
  0x6b   : > { %v841_v50 = vadd.f32 %v813_v16, %v784_v37  ;;  %v671_v52 = vadd.f32 %v643_v25, %v1981_v8  ;;  %v700_v36 = vmul.f32 %v1715_v34, %v1953_v26  ;;  %v561_v60 = vadd.f32 %v533_v38, %v504_v59 }
  0x6c   : > { %v985_v55 = vadd.f32 %v1831_v48, %v954_v54  ;;  %v590_v61 = vmul.f32 %v1709_v31, %v468_v11  ;;  %v645_v4 = vmul.f32 %v1713_v33, %v322_v6  ;;  %v759_v58 = vmul.f32 %v1717_v35, %v468_v11 }
  0x6d   : > { %v898_v45 = vadd.f32 %v870_v21, %v841_v50  ;;  %v728_v47 = vadd.f32 %v700_v36, %v671_v52  ;;  %v814_v8 = vmul.f32 %v1745_v49, %v322_v6  ;;  %v290_v26 = vrot.slane %v2062_v43, 7 }
  0x6e   : > { %1234 = vst [vmem:[%s1861_s22 + $0x48] sm:$0xff] %v985_v55  ;;  %v306_v25 = vrot.slane %v2065_v44, 7  ;;  %v393_v5 = vrot.slane %v2062_v43, 1  ;;  %v409_v13 = vrot.slane %v2065_v44, 1  ;;  %v871_v62 = vmul.f32 %v1759_v56, %v2005_v46 }
  0x6f   : > { %v955_v51 = vadd.f32 %v927_v41, %v898_v45  ;;  %v785_v18 = vadd.f32 %v757_v15, %v728_v47  ;;  %v672_v3 = vadd.f32 %v644_v9, %v2008_v12  ;;  %v534_v32 = vmul.f32 %v1707_v30, %v2062_v43 }
  0x70   : > { %v339_v14 = vsel %vm315_vm1, %v306_v25, %v290_v26  ;;  %v426_v19 = vsel %vm418_vm2, %v393_v5, %v409_v13  ;;  %v701_v16 = vmul.f32 %v1715_v34, %v2002_v10  ;;  %v928_v7 = vmul.f32 %v1761_v57, %v468_v11 }
  0x71   : > { %v986_v21 = vadd.f32 %v1831_v48, %v955_v51  ;;  %v842_v15 = vadd.f32 %v814_v8, %v785_v18  ;;  %v366_v12 = vsel %vm281_vm0, 0.0, %v339_v14  ;;  %v2092_v20 = vadd.f32 %v590_v61, %v561_v60  ;;  %v2114_v8 = vld [vmem:[%s1633_s7 + $0x80] sm:$0xff] }
  0x72   : > { %v505_v6 = vmul.f32 %v1705_v29, %v366_v12  ;;  %v729_v2 = vadd.f32 %v701_v16, %v672_v3  ;;  %v872_v37 = vmul.f32 %v1759_v56, %v2062_v43  ;;  %v591_v10 = vmul.f32 %v1709_v31, %v426_v19 }
  0x73   : > { %1235 = vst [vmem:[%s1861_s22 + $0x50] sm:$0xff] %v986_v21  ;;  %v899_v59 = vadd.f32 %v871_v62, %v842_v15  ;;  %v815_v38 = vmul.f32 %v1745_v49, %v366_v12  ;;  %v323_v11 = vsel %vm315_vm1, %v290_v26, %v306_v25  ;;  %v442_v41 = vsel %vm418_vm2, %v409_v13, %v393_v5  ;;  %v2117_v26 = vld [vmem:[%s1633_s7 + $0x88] sm:$0xff] }
  0x74   : > { %v562_v54 = vadd.f32 %v534_v32, %v505_v6  ;;  %v786_v9 = vadd.f32 %v758_v22, %v729_v2  ;;  %v506_v50 = vmul.f32 %v1705_v29, %v323_v11  ;;  %v646_v36 = vmul.f32 %v1713_v33, %v366_v12 }
  0x75   : > { %v956_v52 = vadd.f32 %v928_v7, %v899_v59  ;;  %v470_v55 = vsel %vm385_vm3, 0.0, %v442_v41  ;;  %v535_v60 = vmul.f32 %v1707_v30, %v2065_v44  ;;  %v760_v61 = vmul.f32 %v1717_v35, %v426_v19 }
  0x76   : > { %v843_v45 = vadd.f32 %v815_v38, %v786_v9  ;;  %v929_v22 = vmul.f32 %v1761_v57, %v426_v19  ;;  %v673_v47 = vadd.f32 %v645_v4, %v2035_v39  ;;  %v2120_v5 = vadd.f32 %v591_v10, %v562_v54 }
  0x77   : > { %v987_v25 = vadd.f32 %v1831_v48, %v956_v52  ;;  %v647_v13 = vmul.f32 %v1713_v33, %v323_v11  ;;  %v702_v51 = vmul.f32 %v1715_v34, %v2005_v46  ;;  %v563_v62 = vadd.f32 %v535_v60, %v506_v50 }
  0x78   : > { %v900_v18 = vadd.f32 %v872_v37, %v843_v45  ;;  %v592_v3 = vmul.f32 %v1709_v31, %v470_v55  ;;  %v816_v14 = vmul.f32 %v1745_v49, %v323_v11  ;;  %v873_v4 = vmul.f32 %v1759_v56, %v2065_v44 }
  0x79   : > { %1236 = vst [vmem:[%s1861_s22 + $0x58] sm:$0xff] %v987_v25  ;;  %v730_v39 = vadd.f32 %v702_v51, %v673_v47  ;;  %v291_v19 = vrot.slane %v2114_v8, 7  ;;  %v307_v32 = vrot.slane %v2117_v26, 7  ;;  %v394_v21 = vrot.slane %v2114_v8, 1 }
  0x7a   : > { %v957_v16 = vadd.f32 %v929_v22, %v900_v18  ;;  %v410_v46 = vrot.slane %v2117_v26, 1  ;;  %v536_v15 = vmul.f32 %v1707_v30, %v2114_v8  ;;  %v674_v6 = vadd.f32 %v646_v36, %v2056_v42 }
  0x7b   : > { %v787_v7 = vadd.f32 %v759_v58, %v730_v39  ;;  %v340_v12 = vsel %vm315_vm1, %v307_v32, %v291_v19  ;;  %v703_v2 = vmul.f32 %v1715_v34, %v2062_v43  ;;  %v761_v59 = vmul.f32 %v1717_v35, %v470_v55 }
  0x7c   : > { %v988_v37 = vadd.f32 %v1831_v48, %v957_v16  ;;  %v368_v10 = vsel %vm281_vm0, 0.0, %v340_v12  ;;  %v427_v38 = vsel %vm418_vm2, %v394_v21, %v410_v46  ;;  %v2147_v11 = vadd.f32 %v592_v3, %v563_v62 }
  0x7d   : > { %v844_v58 = vadd.f32 %v816_v14, %v787_v7  ;;  %v930_v54 = vmul.f32 %v1761_v57, %v470_v55  ;;  %v507_v42 = vmul.f32 %v1705_v29, %v368_v10  ;;  %v593_v43 = vmul.f32 %v1709_v31, %v427_v38 }
  0x7e   : > { %1237 = vst [vmem:[%s1861_s22 + $0x60] sm:$0xff] %v988_v37  ;;  %v731_v9 = vadd.f32 %v703_v2, %v674_v6  ;;  %v817_v41 = vmul.f32 %v1745_v49, %v368_v10  ;;  %v874_v50 = vmul.f32 %v1759_v56, %v2114_v8  ;;  %v324_v60 = vsel %vm315_vm1, %v291_v19, %v307_v32  ;;  %v2174_v19 = vld [vmem:[%s1633_s7 + $0x90] sm:$0xff]  ;;  %v2177_v32 = vld [vmem:[%s1633_s7 + $0x98] sm:$0xff] }
  0x7f   : > { %v901_v52 = vadd.f32 %v873_v4, %v844_v58  ;;  %v564_v36 = vadd.f32 %v536_v15, %v507_v42  ;;  %v443_v55 = vsel %vm418_vm2, %v410_v46, %v394_v21  ;;  %v508_v47 = vmul.f32 %v1705_v29, %v324_v60 }
  0x80   : > { %v788_v45 = vadd.f32 %v760_v61, %v731_v9  ;;  %v472_v22 = vsel %vm385_vm3, 0.0, %v443_v55  ;;  %v537_v25 = vmul.f32 %v1707_v30, %v2117_v26  ;;  %v648_v18 = vmul.f32 %v1713_v33, %v368_v10 }
  0x81   : > { %v958_v51 = vadd.f32 %v930_v54, %v901_v52  ;;  %v762_v62 = vmul.f32 %v1717_v35, %v427_v38  ;;  %v931_v3 = vmul.f32 %v1761_v57, %v427_v38  ;;  %v2168_v14 = vadd.f32 %v593_v43, %v564_v36 }
  0x82   : > { %v845_v39 = vadd.f32 %v817_v41, %v788_v45  ;;  %v675_v61 = vadd.f32 %v647_v13, %v2092_v20  ;;  %v704_v4 = vmul.f32 %v1715_v34, %v2065_v44  ;;  %v565_v21 = vadd.f32 %v537_v25, %v508_v47 }
  0x83   : > { %v989_v16 = vadd.f32 %v1831_v48, %v958_v51  ;;  %v594_v46 = vmul.f32 %v1709_v31, %v472_v22  ;;  %v649_v15 = vmul.f32 %v1713_v33, %v324_v60  ;;  %v763_v6 = vmul.f32 %v1717_v35, %v472_v22 }
  0x84   : > { %v902_v7 = vadd.f32 %v874_v50, %v845_v39  ;;  %v732_v12 = vadd.f32 %v704_v4, %v675_v61  ;;  %v818_v20 = vmul.f32 %v1745_v49, %v324_v60  ;;  %v292_v44 = vrot.slane %v2174_v19, 7 }
  0x85   : > { %1238 = vst [vmem:[%s1861_s22 + $0x68] sm:$0xff] %v989_v16  ;;  %v308_v13 = vrot.slane %v2177_v32, 7  ;;  %v395_v2 = vrot.slane %v2174_v19, 1  ;;  %v411_v37 = vrot.slane %v2177_v32, 1  ;;  %v875_v58 = vmul.f32 %v1759_v56, %v2117_v26 }
  0x86   : > { %v959_v10 = vadd.f32 %v931_v3, %v902_v7  ;;  %v789_v38 = vadd.f32 %v761_v59, %v732_v12  ;;  %v676_v54 = vadd.f32 %v648_v18, %v2120_v5  ;;  %v538_v9 = vmul.f32 %v1707_v30, %v2174_v19 }
  0x87   : > { %v341_v42 = vsel %vm315_vm1, %v308_v13, %v292_v44  ;;  %v428_v43 = vsel %vm418_vm2, %v395_v2, %v411_v37  ;;  %v705_v41 = vmul.f32 %v1715_v34, %v2114_v8  ;;  %v932_v52 = vmul.f32 %v1761_v57, %v472_v22 }
  0x88   : > { %v990_v50 = vadd.f32 %v1831_v48, %v959_v10  ;;  %v846_v59 = vadd.f32 %v818_v20, %v789_v38  ;;  %v370_v5 = vsel %vm281_vm0, 0.0, %v341_v42  ;;  %v2204_v36 = vadd.f32 %v594_v46, %v565_v21  ;;  %v2226_v20 = vld [vmem:[%s1633_s7 + $0xa0] sm:$0xff] }
  0x89   : > { %v509_v60 = vmul.f32 %v1705_v29, %v370_v5  ;;  %v733_v55 = vadd.f32 %v705_v41, %v676_v54  ;;  %v876_v45 = vmul.f32 %v1759_v56, %v2174_v19  ;;  %v595_v8 = vmul.f32 %v1709_v31, %v428_v43 }
  0x8a   : > { %1239 = vst [vmem:[%s1861_s22 + $0x70] sm:$0xff] %v990_v50  ;;  %v903_v47 = vadd.f32 %v875_v58, %v846_v59  ;;  %v819_v25 = vmul.f32 %v1745_v49, %v370_v5  ;;  %v325_v22 = vsel %vm315_vm1, %v292_v44, %v308_v13  ;;  %v444_v3 = vsel %vm418_vm2, %v411_v37, %v395_v2  ;;  %v2229_v44 = vld [vmem:[%s1633_s7 + $0xa8] sm:$0xff] }
  0x8b   : > { %v566_v51 = vadd.f32 %v538_v9, %v509_v60  ;;  %v790_v18 = vadd.f32 %v762_v62, %v733_v55  ;;  %v510_v39 = vmul.f32 %v1705_v29, %v325_v22  ;;  %v650_v4 = vmul.f32 %v1713_v33, %v370_v5 }
  0x8c   : > { %v960_v61 = vadd.f32 %v932_v52, %v903_v47  ;;  %v474_v16 = vsel %vm385_vm3, 0.0, %v444_v3  ;;  %v539_v21 = vmul.f32 %v1707_v30, %v2177_v32  ;;  %v764_v46 = vmul.f32 %v1717_v35, %v428_v43 }
  0x8d   : > { %v847_v7 = vadd.f32 %v819_v25, %v790_v18  ;;  %v933_v62 = vmul.f32 %v1761_v57, %v428_v43  ;;  %v677_v12 = vadd.f32 %v649_v15, %v2147_v11  ;;  %v2232_v2 = vadd.f32 %v595_v8, %v566_v51 }
  0x8e   : > { %v991_v13 = vadd.f32 %v1831_v48, %v960_v61  ;;  %v651_v37 = vmul.f32 %v1713_v33, %v325_v22  ;;  %v706_v10 = vmul.f32 %v1715_v34, %v2117_v26  ;;  %v567_v58 = vadd.f32 %v539_v21, %v510_v39 }
  0x8f   : > { %v904_v38 = vadd.f32 %v876_v45, %v847_v7  ;;  %v596_v54 = vmul.f32 %v1709_v31, %v474_v16  ;;  %v820_v42 = vmul.f32 %v1745_v49, %v325_v22  ;;  %v877_v15 = vmul.f32 %v1759_v56, %v2177_v32 }
  0x90   : > { %1240 = vst [vmem:[%s1861_s22 + $0x78] sm:$0xff] %v991_v13  ;;  %v734_v11 = vadd.f32 %v706_v10, %v677_v12  ;;  %v293_v43 = vrot.slane %v2226_v20, 7  ;;  %v309_v9 = vrot.slane %v2229_v44, 7  ;;  %v396_v50 = vrot.slane %v2226_v20, 1 }
  0x91   : > { %v961_v41 = vadd.f32 %v933_v62, %v904_v38  ;;  %v412_v26 = vrot.slane %v2229_v44, 1  ;;  %v540_v59 = vmul.f32 %v1707_v30, %v2226_v20  ;;  %v678_v60 = vadd.f32 %v650_v4, %v2168_v14 }
  0x92   : > { %v791_v52 = vadd.f32 %v763_v6, %v734_v11  ;;  %v342_v5 = vsel %vm315_vm1, %v309_v9, %v293_v43  ;;  %v707_v55 = vmul.f32 %v1715_v34, %v2174_v19  ;;  %v765_v47 = vmul.f32 %v1717_v35, %v474_v16 }
  0x93   : > { %v992_v45 = vadd.f32 %v1831_v48, %v961_v41  ;;  %v372_v8 = vsel %vm281_vm0, 0.0, %v342_v5  ;;  %v429_v25 = vsel %vm418_vm2, %v396_v50, %v412_v26  ;;  %v2259_v22 = vadd.f32 %v596_v54, %v567_v58 }
  0x94   : > { %v848_v6 = vadd.f32 %v820_v42, %v791_v52  ;;  %v934_v51 = vmul.f32 %v1761_v57, %v474_v16  ;;  %v511_v14 = vmul.f32 %v1705_v29, %v372_v8  ;;  %v597_v19 = vmul.f32 %v1709_v31, %v429_v25 }
  0x95   : > { %1241 = vst [vmem:[%s1861_s22 + $0x80] sm:$0xff] %v992_v45  ;;  %v735_v18 = vadd.f32 %v707_v55, %v678_v60  ;;  %v821_v3 = vmul.f32 %v1745_v49, %v372_v8  ;;  %v878_v39 = vmul.f32 %v1759_v56, %v2226_v20  ;;  %v326_v21 = vsel %vm315_vm1, %v293_v43, %v309_v9  ;;  %v2286_v43 = vld [vmem:[%s1633_s7 + $0xb0] sm:$0xff]  ;;  %v2289_v9 = vld [vmem:[%s1633_s7 + $0xb8] sm:$0xff] }
  0x96   : > { %v905_v61 = vadd.f32 %v877_v15, %v848_v6  ;;  %v568_v4 = vadd.f32 %v540_v59, %v511_v14  ;;  %v445_v16 = vsel %vm418_vm2, %v412_v26, %v396_v50  ;;  %v512_v12 = vmul.f32 %v1705_v29, %v326_v21 }
  0x97   : > { %v792_v7 = vadd.f32 %v764_v46, %v735_v18  ;;  %v476_v62 = vsel %vm385_vm3, 0.0, %v445_v16  ;;  %v541_v13 = vmul.f32 %v1707_v30, %v2229_v44  ;;  %v652_v38 = vmul.f32 %v1713_v33, %v372_v8 }
  0x98   : > { %v962_v10 = vadd.f32 %v934_v51, %v905_v61  ;;  %v766_v58 = vmul.f32 %v1717_v35, %v429_v25  ;;  %v935_v54 = vmul.f32 %v1761_v57, %v429_v25  ;;  %v2280_v42 = vadd.f32 %v597_v19, %v568_v4 }
  0x99   : > { %v849_v11 = vadd.f32 %v821_v3, %v792_v7  ;;  %v679_v46 = vadd.f32 %v651_v37, %v2204_v36  ;;  %v708_v15 = vmul.f32 %v1715_v34, %v2177_v32  ;;  %v569_v50 = vadd.f32 %v541_v13, %v512_v12 }
  0x9a   : > { %v993_v41 = vadd.f32 %v1831_v48, %v962_v10  ;;  %v598_v26 = vmul.f32 %v1709_v31, %v476_v62  ;;  %v653_v59 = vmul.f32 %v1713_v33, %v326_v21  ;;  %v767_v60 = vmul.f32 %v1717_v35, %v476_v62 }
  0x9b   : > { %v906_v52 = vadd.f32 %v878_v39, %v849_v11  ;;  %v736_v5 = vadd.f32 %v708_v15, %v679_v46  ;;  %v822_v36 = vmul.f32 %v1745_v49, %v326_v21  ;;  %v294_v32 = vrot.slane %v2286_v43, 7 }
  0x9c   : > { %1242 = vst [vmem:[%s1861_s22 + $0x88] sm:$0xff] %v993_v41  ;;  %v310_v37 = vrot.slane %v2289_v9, 7  ;;  %v397_v55 = vrot.slane %v2286_v43, 1  ;;  %v413_v45 = vrot.slane %v2289_v9, 1  ;;  %v879_v6 = vmul.f32 %v1759_v56, %v2229_v44 }
  0x9d   : > { %v963_v8 = vadd.f32 %v935_v54, %v906_v52  ;;  %v793_v25 = vadd.f32 %v765_v47, %v736_v5  ;;  %v680_v51 = vadd.f32 %v652_v38, %v2232_v2  ;;  %v542_v18 = vmul.f32 %v1707_v30, %v2286_v43 }
  0x9e   : > { %v343_v14 = vsel %vm315_vm1, %v310_v37, %v294_v32  ;;  %v430_v19 = vsel %vm418_vm2, %v397_v55, %v413_v45  ;;  %v709_v3 = vmul.f32 %v1715_v34, %v2226_v20  ;;  %v936_v61 = vmul.f32 %v1761_v57, %v476_v62 }
  0x9f   : > { %v994_v39 = vadd.f32 %v1831_v48, %v963_v8  ;;  %v850_v47 = vadd.f32 %v822_v36, %v793_v25  ;;  %v374_v2 = vsel %vm281_vm0, 0.0, %v343_v14  ;;  %v2316_v4 = vadd.f32 %v598_v26, %v569_v50  ;;  %v2338_v36 = vld [vmem:[%s1633_s7 + $0xc0] sm:$0xff] }
  0xa0   : > { %v513_v21 = vmul.f32 %v1705_v29, %v374_v2  ;;  %v737_v16 = vadd.f32 %v709_v3, %v680_v51  ;;  %v880_v7 = vmul.f32 %v1759_v56, %v2286_v43  ;;  %v599_v20 = vmul.f32 %v1709_v31, %v430_v19 }
  0xa1   : > { %1243 = vst [vmem:[%s1861_s22 + $0x90] sm:$0xff] %v994_v39  ;;  %v907_v12 = vadd.f32 %v879_v6, %v850_v47  ;;  %v823_v13 = vmul.f32 %v1745_v49, %v374_v2  ;;  %v327_v62 = vsel %vm315_vm1, %v294_v32, %v310_v37  ;;  %v446_v54 = vsel %vm418_vm2, %v413_v45, %v397_v55  ;;  %v2341_v32 = vld [vmem:[%s1633_s7 + $0xc8] sm:$0xff] }
  0xa2   : > { %v570_v10 = vadd.f32 %v542_v18, %v513_v21  ;;  %v794_v38 = vadd.f32 %v766_v58, %v737_v16  ;;  %v514_v11 = vmul.f32 %v1705_v29, %v327_v62  ;;  %v654_v15 = vmul.f32 %v1713_v33, %v374_v2 }
  0xa3   : > { %v964_v46 = vadd.f32 %v936_v61, %v907_v12  ;;  %v478_v41 = vsel %vm385_vm3, 0.0, %v446_v54  ;;  %v543_v50 = vmul.f32 %v1707_v30, %v2289_v9  ;;  %v768_v26 = vmul.f32 %v1717_v35, %v430_v19 }
  0xa4   : > { %v851_v52 = vadd.f32 %v823_v13, %v794_v38  ;;  %v937_v58 = vmul.f32 %v1761_v57, %v430_v19  ;;  %v681_v5 = vadd.f32 %v653_v59, %v2259_v22  ;;  %v2344_v55 = vadd.f32 %v599_v20, %v570_v10 }
  0xa5   : > { %v995_v37 = vadd.f32 %v1831_v48, %v964_v46  ;;  %v655_v45 = vmul.f32 %v1713_v33, %v327_v62  ;;  %v710_v8 = vmul.f32 %v1715_v34, %v2229_v44  ;;  %v571_v6 = vadd.f32 %v543_v50, %v514_v11 }
  0xa6   : > { %v908_v25 = vadd.f32 %v880_v7, %v851_v52  ;;  %v600_v51 = vmul.f32 %v1709_v31, %v478_v41  ;;  %v824_v57 = vmul.f32 %v1745_v49, %v327_v62  ;;  %v881_v59 = vmul.f32 %v1759_v56, %v2289_v9  ;;  %v2373_v62 = vld [vmem:[#allocation5 + $0x8] ss:$0 sm:$0xff] }
  0xa7   : > { %1244 = vst [vmem:[%s1861_s22 + $0x98] sm:$0xff] %v995_v37  ;;  %v738_v22 = vadd.f32 %v710_v8, %v681_v5  ;;  %v295_v14 = vrot.slane %v2338_v36, 7  ;;  %v311_v19 = vrot.slane %v2341_v32, 7  ;;  %v398_v3 = vrot.slane %v2338_v36, 1 }
  0xa8   : > { %v965_v18 = vadd.f32 %v937_v58, %v908_v25  ;;  %v414_v44 = vrot.slane %v2341_v32, 1  ;;  %v544_v39 = vmul.f32 %v1707_v30, %v2338_v36  ;;  %v682_v2 = vadd.f32 %v654_v15, %v2280_v42 }
  0xa9   : > { %v795_v47 = vadd.f32 %v767_v60, %v738_v22  ;;  %v344_v61 = vsel %vm315_vm1, %v311_v19, %v295_v14  ;;  %v711_v21 = vmul.f32 %v1715_v34, %v2286_v43  ;;  %v769_v7 = vmul.f32 %v1717_v35, %v478_v41 }
  0xaa   : > { %v996_v16 = vadd.f32 %v1831_v48, %v965_v18  ;;  %v376_v12 = vsel %vm281_vm0, 0.0, %v344_v61  ;;  %v431_v20 = vsel %vm418_vm2, %v398_v3, %v414_v44  ;;  %v2371_v13 = vadd.f32 %v600_v51, %v571_v6 }
  0xab   : > { %v852_v60 = vadd.f32 %v824_v57, %v795_v47  ;;  %v938_v42 = vmul.f32 %v2373_v62, %v478_v41  ;;  %v515_v10 = vmul.f32 %v1705_v29, %v376_v12  ;;  %v601_v43 = vmul.f32 %v1709_v31, %v431_v20 }
  0xac   : > { %1245 = vst [vmem:[%s1861_s22 + $0xa0] sm:$0xff] %v996_v16  ;;  %v739_v38 = vadd.f32 %v711_v21, %v682_v2  ;;  %v825_v54 = vmul.f32 %v1745_v49, %v376_v12  ;;  %v882_v11 = vmul.f32 %v1759_v56, %v2338_v36  ;;  %v328_v50 = vsel %vm315_vm1, %v295_v14, %v311_v19  ;;  %v2400_v14 = vld [vmem:[%s1633_s7 + $0xd0] sm:$0xff]  ;;  %v2403_v19 = vld [vmem:[%s1633_s7 + $0xd8] sm:$0xff] }
  0xad   : > { %v909_v46 = vadd.f32 %v881_v59, %v852_v60  ;;  %v572_v15 = vadd.f32 %v544_v39, %v515_v10  ;;  %v447_v41 = vsel %vm418_vm2, %v414_v44, %v398_v3  ;;  %v516_v5 = vmul.f32 %v1705_v29, %v328_v50 }
  0xae   : > { %v796_v52 = vadd.f32 %v768_v26, %v739_v38  ;;  %v480_v58 = vsel %vm385_vm3, 0.0, %v447_v41  ;;  %v545_v37 = vmul.f32 %v1707_v30, %v2341_v32  ;;  %v656_v25 = vmul.f32 %v1713_v33, %v376_v12 }
  0xaf   : > { %v966_v8 = vadd.f32 %v938_v42, %v909_v46  ;;  %v770_v6 = vmul.f32 %v1717_v35, %v431_v20  ;;  %v939_v51 = vmul.f32 %v2373_v62, %v431_v20  ;;  %v2394_v57 = vadd.f32 %v601_v43, %v572_v15 }
  0xb0   : > { %v853_v22 = vadd.f32 %v825_v54, %v796_v52  ;;  %v683_v26 = vadd.f32 %v655_v45, %v2316_v4  ;;  %v712_v59 = vmul.f32 %v1715_v34, %v2289_v9  ;;  %v573_v3 = vadd.f32 %v545_v37, %v516_v5 }
  0xb1   : > { %v997_v18 = vadd.f32 %v1831_v48, %v966_v8  ;;  %v602_v44 = vmul.f32 %v1709_v31, %v480_v58  ;;  %v657_v39 = vmul.f32 %v1713_v33, %v328_v50  ;;  %v771_v2 = vmul.f32 %v1717_v35, %v480_v58 }
  0xb2   : > { %v910_v47 = vadd.f32 %v882_v11, %v853_v22  ;;  %v740_v61 = vadd.f32 %v712_v59, %v683_v26  ;;  %v826_v4 = vmul.f32 %v1745_v49, %v328_v50  ;;  %v296_v9 = vrot.slane %v2400_v14, 7 }
  0xb3   : > { %1246 = vst [vmem:[%s1861_s22 + $0xa8] sm:$0xff] %v997_v18  ;;  %v312_v45 = vrot.slane %v2403_v19, 7  ;;  %v399_v21 = vrot.slane %v2400_v14, 1  ;;  %v415_v48 = vrot.slane %v2403_v19, 1  ;;  %v883_v20 = vmul.f32 %v1759_v56, %v2341_v32 }
  0xb4   : > { %v967_v16 = vadd.f32 %v939_v51, %v910_v47  ;;  %v797_v12 = vadd.f32 %v769_v7, %v740_v61  ;;  %v684_v60 = vadd.f32 %v656_v25, %v2344_v55  ;;  %v546_v43 = vmul.f32 %v1707_v30, %v2400_v14  ;;  %v2429_v7 = vld [vmem:[%s2663_s2] ss:$0 sm:$0xff] }
  0xb5   : > { %v345_v42 = vsel %vm315_vm1, %v312_v45, %v296_v9  ;;  %v432_v10 = vsel %vm418_vm2, %v399_v21, %v415_v48  ;;  %v713_v38 = vmul.f32 %v1715_v34, %v2338_v36  ;;  %v940_v11 = vmul.f32 %v2373_v62, %v480_v58 }
  0xb6   : > { %v998_v54 = vadd.f32 %v2429_v7, %v967_v16  ;;  %v854_v55 = vadd.f32 %v826_v4, %v797_v12  ;;  %v378_v46 = vsel %vm281_vm0, 0.0, %v345_v42  ;;  %v2435_v15 = vadd.f32 %v602_v44, %v573_v3  ;;  %v2457_v4 = vld [vmem:[%s1633_s7 + $0xe0] sm:$0xff] }
  0xb7   : > { %v517_v50 = vmul.f32 %v1705_v29, %v378_v46  ;;  %v741_v41 = vadd.f32 %v713_v38, %v684_v60  ;;  %v884_v36 = vmul.f32 %v1759_v56, %v2400_v14  ;;  %v603_v5 = vmul.f32 %v1709_v31, %v432_v10 }
  0xb8   : > { %1247 = vst [vmem:[%s1861_s22 + $0xb0] sm:$0xff] %v998_v54  ;;  %v911_v52 = vadd.f32 %v883_v20, %v854_v55  ;;  %v827_v37 = vmul.f32 %v1745_v49, %v378_v46  ;;  %v329_v58 = vsel %vm315_vm1, %v296_v9, %v312_v45  ;;  %v448_v51 = vsel %vm418_vm2, %v415_v48, %v399_v21  ;;  %v2460_v9 = vld [vmem:[%s1633_s7 + $0xe8] sm:$0xff] }
  0xb9   : > { %v574_v8 = vadd.f32 %v546_v43, %v517_v50  ;;  %v798_v25 = vadd.f32 %v770_v6, %v741_v41  ;;  %v518_v22 = vmul.f32 %v1705_v29, %v329_v58  ;;  %v658_v59 = vmul.f32 %v1713_v33, %v378_v46 }
  0xba   : > { %v968_v26 = vadd.f32 %v940_v11, %v911_v52  ;;  %v482_v18 = vsel %vm385_vm3, 0.0, %v448_v51  ;;  %v547_v3 = vmul.f32 %v1707_v30, %v2403_v19  ;;  %v772_v44 = vmul.f32 %v1717_v35, %v432_v10 }
  0xbb   : > { %v855_v47 = vadd.f32 %v827_v37, %v798_v25  ;;  %v941_v6 = vmul.f32 %v2373_v62, %v432_v10  ;;  %v685_v61 = vadd.f32 %v657_v39, %v2371_v13  ;;  %v631_v21 = vadd.f32 %v603_v5, %v574_v8 }
  0xbc   : > { %v999_v45 = vadd.f32 %v2429_v7, %v968_v26  ;;  %v659_v48 = vmul.f32 %v1713_v33, %v329_v58  ;;  %v714_v16 = vmul.f32 %v1715_v34, %v2341_v32  ;;  %v575_v20 = vadd.f32 %v547_v3, %v518_v22 }
  0xbd   : > { %v912_v12 = vadd.f32 %v884_v36, %v855_v47  ;;  %v604_v60 = vmul.f32 %v1709_v31, %v482_v18  ;;  %v773_v42 = vmul.f32 %v1717_v35, %v482_v18  ;;  %v828_v39 = vmul.f32 %v1745_v49, %v329_v58  ;;  %v2505_v47 = vld [vmem:[%s1633_s7 + $0xf0] sm:$0xff] }
  0xbe   : > { %1248 = vst [vmem:[%s1861_s22 + $0xb8] sm:$0xff] %v999_v45  ;;  %v742_v13 = vadd.f32 %v714_v16, %v685_v61  ;;  %v297_v10 = vrot.slane %v2457_v4, 7  ;;  %v313_v43 = vrot.slane %v2460_v9, 7  ;;  %v400_v54 = vrot.slane %v2457_v4, 1 }
  0xbf   : > { %v969_v38 = vadd.f32 %v941_v6, %v912_v12  ;;  %v416_v32 = vrot.slane %v2460_v9, 1  ;;  %v686_v55 = vadd.f32 %v658_v59, %v2394_v57  ;;  %v885_v46 = vmul.f32 %v1759_v56, %v2403_v19  ;;  %v2508_v6 = vld [vmem:[%s1633_s7 + $0xf8] sm:$0xff] }
  0xc0   : > { %v799_v11 = vadd.f32 %v771_v2, %v742_v13  ;;  %v346_v50 = vsel %vm315_vm1, %v313_v43, %v297_v10  ;;  %v715_v41 = vmul.f32 %v1715_v34, %v2400_v14  ;;  %v942_v52 = vmul.f32 %v2373_v62, %v482_v18 }
  0xc1   : > { %v1000_v36 = vadd.f32 %v2429_v7, %v969_v38  ;;  %v2485_v5 = vsel %vm281_vm0, 0.0, %v346_v50  ;;  %v433_v57 = vsel %vm418_vm2, %v400_v54, %v416_v32  ;;  %v632_v2 = vadd.f32 %v604_v60, %v575_v20 }
  0xc2   : > { %v856_v37 = vadd.f32 %v828_v39, %v799_v11  ;;  %v743_v58 = vadd.f32 %v715_v41, %v686_v55  ;;  %v886_v8 = vmul.f32 %v1759_v56, %v2457_v4  ;;  %v660_v14 = vmul.f32 %v1713_v33, %v2485_v5 }
  0xc3   : > { %1249 = vst [vmem:[%s1861_s22 + $0xc0] sm:$0xff] %v1000_v36  ;;  %v829_v25 = vmul.f32 %v1745_v49, %v2485_v5  ;;  %v2498_v51 = vsel %vm315_vm1, %v297_v10, %v313_v43  ;;  %v449_v22 = vsel %vm418_vm2, %v416_v32, %v400_v54  ;;  %v774_v59 = vmul.f32 %v1717_v35, %v433_v57 }
  0xc4   : > { %v913_v26 = vadd.f32 %v885_v46, %v856_v37  ;;  %v800_v18 = vadd.f32 %v772_v44, %v743_v58  ;;  %v943_v3 = vmul.f32 %v2373_v62, %v433_v57  ;;  %v2511_v61 = vmul.f32 %v1709_v31, %v433_v57 }
  0xc5   : > { %v484_v45 = vsel %vm385_vm3, 0.0, %v449_v22  ;;  %v687_v16 = vadd.f32 %v659_v48, %v2435_v15  ;;  %v716_v12 = vmul.f32 %v1715_v34, %v2403_v19  ;;  %v661_v60 = vmul.f32 %v1713_v33, %v2498_v51 }
  0xc6   : > { %v970_v20 = vadd.f32 %v942_v52, %v913_v26  ;;  %v857_v44 = vadd.f32 %v829_v25, %v800_v18  ;;  %v830_v13 = vmul.f32 %v1745_v49, %v2498_v51  ;;  %v887_v10 = vmul.f32 %v1759_v56, %v2460_v9 }
  0xc7   : > { %v744_v39 = vadd.f32 %v716_v12, %v687_v16  ;;  %v298_v43 = vrot.slane %v2505_v47, 7  ;;  %v314_v15 = vrot.slane %v2508_v6, 7  ;;  %v401_v38 = vrot.slane %v2505_v47, 1 }
  0xc8   : > { %v1001_v48 = vadd.f32 %v2429_v7, %v970_v20  ;;  %v914_v19 = vadd.f32 %v886_v8, %v857_v44  ;;  %v417_v54 = vrot.slane %v2508_v6, 1  ;;  %v688_v11 = vadd.f32 %v660_v14, %v631_v21 }
  0xc9   : > { %v801_v32 = vadd.f32 %v773_v42, %v744_v39  ;;  %v347_v55 = vsel %vm315_vm1, %v314_v15, %v298_v43  ;;  %v717_v46 = vmul.f32 %v1715_v34, %v2457_v4  ;;  %v775_v41 = vmul.f32 %v1717_v35, %v484_v45 }
  0xca   : > { %1250 = vst [vmem:[%s1861_s22 + $0xc8] sm:$0xff] %v1001_v48  ;;  %v971_v50 = vadd.f32 %v943_v3, %v914_v19  ;;  %v944_v36 = vmul.f32 %v2373_v62, %v484_v45  ;;  %v382_v52 = vsel %vm281_vm0, 0.0, %v347_v55  ;;  %v2540_v42 = vsel %vm418_vm2, %v401_v38, %v417_v54 }
  0xcb   : > { %v858_v57 = vadd.f32 %v830_v13, %v801_v32  ;;  %v745_v37 = vadd.f32 %v717_v46, %v688_v11  ;;  %v831_v21 = vmul.f32 %v1745_v49, %v382_v52  ;;  %v331_v8 = vsel %vm315_vm1, %v298_v43, %v314_v15  ;;  %v1347_v11 = vld [vmem:[%s1633_s7 + $0x10] sm:$0xff] }
  0xcc   : > { %v1002_v58 = vadd.f32 %v2429_v7, %v971_v50  ;;  %v450_v14 = vsel %vm418_vm2, %v417_v54, %v401_v38  ;;  %v689_v25 = vadd.f32 %v661_v60, %v632_v2  ;;  %v888_v18 = vmul.f32 %v1759_v56, %v2505_v47  ;;  %v1345_v60 = vld [vmem:[%s1633_s7] sm:$0xff] }
  0xcd   : > { %v915_v22 = vadd.f32 %v887_v10, %v858_v57  ;;  %v802_v26 = vadd.f32 %v774_v59, %v745_v37  ;;  %v718_v3 = vmul.f32 %v1715_v34, %v2460_v9  ;;  %v945_v16 = vmul.f32 %v2373_v62, %v2540_v42 }
  0xce   : > { %1251 = vst [vmem:[%s1861_s22 + $0xd0] sm:$0xff] %v1002_v58  ;;  %v2557_v12 = vsel %vm385_vm3, 0.0, %v450_v14  ;;  %v832_v1 = vmul.f32 %v1745_v49, %v331_v8  ;;  %v1035_v2 = vmul.f32 %v1713_v33, %v1692_v24  ;;  %v1037_v13 = vmul.f32 %v1345_v60, %v1715_v34  ;;  %v1348_v14 = vld [vmem:[%s1633_s7 + $0x18] sm:$0xff] }
  0xcf   : > { %v972_v59 = vadd.f32 %v944_v36, %v915_v22  ;;  %v859_v20 = vadd.f32 %v831_v21, %v802_v26  ;;  %v746_v44 = vadd.f32 %v718_v3, %v689_v25  ;;  %v1068_v39 = vmul.f32 %v1709_v31, %v484_v45  ;;  %v1346_v45 = vld [vmem:[%s1633_s7 + $0x8] sm:$0xff] }
  0xd0   : > { %v889_v23 = vmul.f32 %v1759_v56, %v2508_v6  ;;  %v1041_v10 = vmul.f32 %v1717_v35, %v1699_v27  ;;  %v1045_v24 = vmul.f32 %v1745_v49, %v1728_v40  ;;  %v1039_v19 = vadd.f32 %v1037_v13, %v1035_v2 }
  0xd1   : > { %v1003_v43 = vadd.f32 %v2429_v7, %v972_v59  ;;  %v916_v15 = vadd.f32 %v888_v18, %v859_v20  ;;  %v803_v48 = vadd.f32 %v775_v41, %v746_v44  ;;  %v946_v38 = vmul.f32 %v2373_v62, %v2557_v12 }
  0xd2   : > { %v1036_v31 = vmul.f32 %v1713_v33, %v1754_v53  ;;  %v1038_v54 = vmul.f32 %v1346_v45, %v1715_v34  ;;  %v1042_v27 = vmul.f32 %v1717_v35, %v1773_v63  ;;  %v1043_v55 = vadd.f32 %v1041_v10, %v1039_v19 }
  0xd3   : > { %1252 = vst [vmem:[%s1861_s22 + $0xd8] sm:$0xff] %v1003_v43  ;;  %v973_v40 = vadd.f32 %v945_v16, %v916_v15  ;;  %v860_v32 = vadd.f32 %v832_v1, %v803_v48  ;;  %v1049_v46 = vmul.f32 %v1347_v11, %v1759_v56  ;;  %v1046_v41 = vmul.f32 %v1745_v49, %v1797_v17 }
  0xd4   : > { %v1040_v50 = vadd.f32 %v1038_v54, %v1036_v31  ;;  %v1061_v53 = vmul.f32 %v1705_v29, %v2485_v5  ;;  %v1063_v36 = vmul.f32 %v1707_v30, %v2457_v4  ;;  %v1047_v37 = vadd.f32 %v1045_v24, %v1043_v55 }
  0xd5   : > { %v1004_v63 = vadd.f32 %v2429_v7, %v973_v40  ;;  %v917_v57 = vadd.f32 %v889_v23, %v860_v32  ;;  %v1053_v21 = vmul.f32 %v2373_v62, %v1703_v28  ;;  %v1050_v25 = vmul.f32 %v1348_v14, %v1759_v56 }
  0xd6   : > { %v1044_v58 = vadd.f32 %v1042_v27, %v1040_v50  ;;  %v1065_v22 = vadd.f32 %v1063_v36, %v1061_v53  ;;  %v1071_v49 = vmul.f32 %v1713_v33, %v382_v52  ;;  %v1051_v5 = vadd.f32 %v1049_v46, %v1047_v37 }
  0xd7   : > { %1253 = vst [vmem:[%s1861_s22 + $0xe0] sm:$0xff] %v1004_v63  ;;  %v974_v17 = vadd.f32 %v946_v38, %v917_v57  ;;  %v1062_v4 = vmul.f32 %v1705_v29, %v2498_v51  ;;  %v1064_v26 = vmul.f32 %v1707_v30, %v2460_v9  ;;  %v1054_v28 = vmul.f32 %v2373_v62, %v1777_v0 }
  0xd8   : > { %v1048_v18 = vadd.f32 %v1046_v41, %v1044_v58  ;;  %v1069_v56 = vadd.f32 %v2511_v61, %v1065_v22  ;;  %v1075_v3 = vmul.f32 %v1715_v34, %v2505_v47  ;;  %v1055_v16 = vadd.f32 %v1053_v21, %v1051_v5 }
  0xd9   : > { %v1005_v52 = vadd.f32 %v2429_v7, %v974_v17  ;;  %v1066_v1 = vadd.f32 %v1064_v26, %v1062_v4  ;;  %v1072_v2 = vmul.f32 %v1713_v33, %v331_v8  ;;  %v1079_v9 = vmul.f32 %v1717_v35, %v2540_v42 }
  0xda   : > { %v1052_v29 = vadd.f32 %v1050_v25, %v1048_v18  ;;  %v1073_v30 = vadd.f32 %v1071_v49, %v1069_v56  ;;  %v1057_v0 = vadd.f32 %v2429_v7, %v1055_v16  ;;  %v1076_v51 = vmul.f32 %v1715_v34, %v2508_v6 }
  0xdb   : > { %1254 = vst [vmem:[%s1861_s22 + $0xe8] sm:$0xff] %v1005_v52  ;;  %v1070_v62 = vadd.f32 %v1068_v39, %v1066_v1  ;;  %v1080_v42 = vmul.f32 %v1717_v35, %v2557_v12 }
  0xdc   : > { %v1056_v47 = vadd.f32 %v1054_v28, %v1052_v29  ;;  %v1077_v61 = vadd.f32 %v1075_v3, %v1073_v30  ;;  %1059 = vst [vmem:[%s1861_s22] sm:$0xff] %v1057_v0 }
  0xdd   : > { %v1074_v33 = vadd.f32 %v1072_v2, %v1070_v62 }
  0xde   : > { %v1058_v8 = vadd.f32 %v2429_v7, %v1056_v47  ;;  %v1081_v59 = vadd.f32 %v1079_v9, %v1077_v61 }
  0xdf   : > { %v1078_v20 = vadd.f32 %v1076_v51, %v1074_v33 }
  0xe0   : > { %1060 = vst [vmem:[%s1861_s22 + $0x8] sm:$0xff] %v1058_v8  ;;  %v1083_v34 = vadd.f32 %v2429_v7, %v1081_v59 }
  0xe1   : > { %v1082_v6 = vadd.f32 %v1080_v42, %v1078_v20 }
  0xe2   : > { %1255 = vst [vmem:[%s1861_s22 + $0xf0] sm:$0xff] %v1083_v34 }
  0xe3   : > { %v1084_v44 = vadd.f32 %v2429_v7, %v1082_v6 }
  0xe5   : > { %1256 = vst [vmem:[%s1861_s22 + $0xf8] sm:$0xff] %v1084_v44 }
  0xe6   : > { %1436 = shalt.err (!%p1433_p0)
}
  0xe7   : > { %s1500_s6 = smov 128   ;;  %s1501_s20 = smov 8  }
  0xe8   : > { %1270 = dma.vmem_to_hbm [thread:$0]  (%p1604_p5), %s1103_s24, 4096, %s1105_s25, %s1089_s26, %s1500_s6, %s1500_s6, %s1501_s20  }
  0xe9 PF: > { %s1119_s22 = sand.u32 1, %s1475_s12   ;;  %p1281_p3 = pnand %p1219_p11, %p1571_p6 }
  0xea   : > { %s1120_s27 = scalar_lea.sflag [#allocation4], %s1119_s22 }
  0xeb   : > { %p1282_p7 = pneg %p1281_p3 }
  0xed   : > { %1470 = dma.done.wait (%p1282_p7), %s1120_s27, 4096  }
  0xee   : > { %1472 = vsyncadd (%p1282_p7), %s1120_s27, 4294963200  ;;  %s20_s17 = sadd.s32 1, %s1495_s17   ;;  %s2676_s12 = smov %s1479_s13 }
  0xef   : > { %p17_p9 = scmp.ge.s32.totalorder %s20_s17, 4   ;;  %s2677_s13 = smov %s1483_s14 }
  0xf0   : > { %s2678_s14 = smov %s1613_s18  ;;  %s2679_s15 = smov %s1491_s16 }
  0xf1   : > { %s2680_s16 = smov %s2682_s5  ;;  %19 = sbr.rel (!%p17_p9) target bundleno = 9 (0x9), region = 87 }
  0xf6   :  { %1126 = vsyncpa [#allocation3], 1 }
  0xf7   :  { %1128 = vsyncpa [#allocation3 + $0x1], 1 }
  0xf8   :  { %1129 = vsyncpa [#allocation6], 1 }
  0xf9   :  { %1130 = vsyncpa [#allocation4], 1 }
  0xfa   :  { %1132 = vsyncpa [#allocation4 + $0x1], 1 }

</bundles_post_ra>
